<compile_context>
chip_gen: v7x
topology: tpu7x:2x2x1
jax: 0.10.0
libtpu: 0.0.40
codegen_flags: <defaults>
</compile_context>

<pallas_src>
import numpy as np
import jax
import jax.numpy as jnp
from jax import lax
from jax.experimental import pallas as pl
from jax.experimental.pallas import tpu as pltpu

# ----------------------- small Gemma3-like config ---------------------------
BATCH = 2
SEQ = 8
HIDDEN = 32
INTERMEDIATE = 64
NUM_HEADS = 4
NUM_KV_HEADS = 2
HEAD_DIM = 16
GROUPS = NUM_HEADS // NUM_KV_HEADS
EPS = 1e-6
QUERY_PRE_ATTN_SCALAR = float(HEAD_DIM)
SCALING = QUERY_PRE_ATTN_SCALAR ** -0.5
ROPE_THETA_GLOBAL = 1_000_000.0
ROPE_LOCAL_BASE_FREQ = 10_000.0
SLIDING_WINDOW = 4
SLIDING_WINDOW_PATTERN = 6
LAYER_IDX = 0
IS_SLIDING = bool((LAYER_IDX + 1) % SLIDING_WINDOW_PATTERN)   # True for layer 0

BS = BATCH * SEQ                       # batch folded into the row axis
QD = NUM_HEADS * HEAD_DIM              # 64
KD = NUM_KV_HEADS * HEAD_DIM           # 32
QKD = QD + KD                          # 96: merged q|k slab width
NUM_QK_HEADS = NUM_HEADS + NUM_KV_HEADS

# Large finite stand-in for torch.finfo(float32).min: identical softmax output
# (exp -> 0) but `mask - rowmax` cannot overflow to -inf (and survives a later
# bf16 cast of scores).
MASK_VALUE = -1e30


# ------------------------------ kernel --------------------------------------
def _make_kernel(rows, gemm_dtype):
    """Kernel body for one grid step over `rows` = (batches per block) * SEQ."""
    nh_rows = NUM_HEADS * rows
    rot_off = 0
    mean_off = QKD
    ones_off = 2 * QKD
    cos_off = ones_off + nh_rows
    sin_off = cos_off + rows

    def rmsnorm(t, scale):
        # Gemma RMSNorm; `scale` already holds (1 + weight).
        var = jnp.mean(t * t, axis=-1, keepdims=True)
        return t * lax.rsqrt(var + EPS) * scale

    def kernel(x_ref, mask_ref, ln_ref, tab_ref, w_in_ref, w_out_ref, out_ref):
        x = x_ref[...]                                   # (rows, H)   fp32
        ln = ln_ref[...]                                 # (4, H)      (1 + w)
        tab = tab_ref[...]                               # (T, 96)     fp32 tables
        w_in = w_in_ref[...]                             # (2H, 128)   q|k|v ; gate|up
        w_out = w_out_ref[...]                           # (64, 64)    o_proj | down_proj

        rot_qk = tab[rot_off:rot_off + QKD, :]           # signed rotate-half (row-scaled)
        mean_qk = tab[mean_off:mean_off + QKD, :]        # block-diag 1/HEAD_DIM
        ones_bd = tab[ones_off:ones_off + nh_rows, :nh_rows]   # per-head row-sum
        cos_qk = tab[cos_off:cos_off + rows, :]          # (rows, 96), scale folded in
        sin_qk = tab[sin_off:sin_off + rows, :]          # (rows, 96)

        residual = x
        h = rmsnorm(x, ln[0:1, :])                       # input_layernorm

        # ---- fused q|k|v projection: one (rows,H) @ (H,128) MXU op ----------
        qkv = jnp.dot(h.astype(gemm_dtype), w_in[:HIDDEN, :],
                      preferred_element_type=jnp.float32)               # (rows, 128)
        qk = qkv[:, :QKD]                                # q|k slab (rows, 96)
        v = qkv[:, QKD:]                                 # (rows, 32)

        # ---- merged per-head q/k RMSNorm + RoPE over the 96-lane slab -------
        # per-head mean(x^2) via one block-diag matmul; rotate_half via one
        # signed block-diag permutation matmul; (1 + q/k_norm.weight) is folded
        # into the cos table / rot rows (wrapper-side, parameter-only work).
        ms = jnp.dot(qk * qk, mean_qk, preferred_element_type=jnp.float32)
        qk_n = qk * lax.rsqrt(ms + EPS)
        qk_rope = (qk_n * cos_qk +
                   jnp.dot(qk_n, rot_qk, preferred_element_type=jnp.float32) * sin_qk)
        q_rope = qk_rope[:, :QD].astype(gemm_dtype)      # (rows, 64)
        k_rope = qk_rope[:, QD:].astype(gemm_dtype)      # (rows, 32)
        v_g = v.astype(gemm_dtype)

        # ---- GQA attention: per-head score tiles lane-concatenated, then the
        # mask / max / exp / per-head row-sum / divide run ONCE over the slab.
        tiles = []
        for hd in range(NUM_HEADS):
            kvh = hd // GROUPS
            q_h = q_rope[:, hd * HEAD_DIM:(hd + 1) * HEAD_DIM]
            k_h = k_rope[:, kvh * HEAD_DIM:(kvh + 1) * HEAD_DIM]
            tiles.append(lax.dot_general(q_h, k_h, (((1,), (1,)), ((), ())),
                                         preferred_element_type=jnp.float32))
        s = jnp.concatenate(tiles, axis=-1) * SCALING + mask_ref[...]    # (rows, 4*rows)

        # One per-row offset for the whole slab: it is >= every per-head max
        # and a per-row constant cancels exactly inside each head's softmax.
        s = s - jnp.max(s, axis=-1, keepdims=True)
        p = jnp.exp(s)
        denom = jnp.dot(p, ones_bd, preferred_element_type=jnp.float32)  # per-head row sums
        p = (p / denom).astype(gemm_dtype)               # exact divide (no approx recip)

        outs = []
        for hd in range(NUM_HEADS):
            kvh = hd // GROUPS
            p_h = p[:, hd * rows:(hd + 1) * rows]
            v_h = v_g[:, kvh * HEAD_DIM:(kvh + 1) * HEAD_DIM]
            outs.append(jnp.dot(p_h, v_h, preferred_element_type=jnp.float32))
        attn = jnp.concatenate(outs, axis=-1).astype(gemm_dtype)         # (rows, 64)
        attn = jnp.dot(attn, w_out[:, :HIDDEN],
                       preferred_element_type=jnp.float32)               # o_proj

        h2 = residual + rmsnorm(attn, ln[1:2, :])        # post_attention_layernorm
        residual2 = h2

        # ---- MLP with fused gate|up projection ((rows,H) @ (H,128)) ---------
        hn = rmsnorm(h2, ln[2:3, :])                     # pre_feedforward_layernorm
        gu = jnp.dot(hn.astype(gemm_dtype), w_in[HIDDEN:, :],
                     preferred_element_type=jnp.float32)                 # (rows, 128)
        gate = gu[:, :INTERMEDIATE]
        up = gu[:, INTERMEDIATE:]
        act = jax.nn.gelu(gate, approximate=True) * up   # gelu_pytorch_tanh (fp32)
        mlp = jnp.dot(act.astype(gemm_dtype), w_out[:, HIDDEN:],
                      preferred_element_type=jnp.float32)                # down_proj
        mlp = rmsnorm(mlp, ln[3:4, :])                   # post_feedforward_layernorm

        out_ref[...] = (residual2 + mlp).astype(out_ref.dtype)

    return kernel


# --------------------- wrapper-side constant builders ------------------------
def _rope_cos_sin(base):
    inv = 1.0 / (base ** (np.arange(0, HEAD_DIM, 2, dtype=np.float32) / HEAD_DIM))
    pos = np.arange(SEQ, dtype=np.float32)
    freqs = pos[:, None] * inv[None, :]
    emb = np.concatenate([freqs, freqs], axis=-1)        # (S, Dh)
    return np.cos(emb).astype(np.float32), np.sin(emb).astype(np.float32)


def _build_tables(cos, sin, qn, kn, rows, batches_per_block):
    """One fp32 (T, 96) constant slab: rot | mean | ones_bd | cos | sin."""
    half = HEAD_DIM // 2
    qn_w = np.asarray(qn, np.float32).reshape(-1)
    kn_w = np.asarray(kn, np.float32).reshape(-1)
    scale = np.concatenate([np.tile(1.0 + qn_w, NUM_HEADS),
                            np.tile(1.0 + kn_w, NUM_KV_HEADS)]).astype(np.float32)

    cos_np = np.asarray(cos, np.float32)                 # (SEQ, HEAD_DIM)
    sin_np = np.asarray(sin, np.float32)
    cos_t = np.tile(np.tile(cos_np, (1, NUM_QK_HEADS)), (batches_per_block, 1))
    sin_t = np.tile(np.tile(sin_np, (1, NUM_QK_HEADS)), (batches_per_block, 1))
    cos_t = (cos_t * scale[None, :]).astype(np.float32)  # fold (1 + q/k norm weight)
    sin_t = sin_t.astype(np.float32)

    # signed rotate-half permutation per head, rows pre-scaled by (1 + w):
    # rot(x)[d] = -x[d+half], rot(x)[d+half] = x[d]
    rot = np.zeros((QKD, QKD), np.float32)
    for hd in range(NUM_QK_HEADS):
        o = hd * HEAD_DIM
        for d in range(half):
            rot[o + d + half, o + d] = -1.0
            rot[o + d, o + d + half] = 1.0
    rot = scale[:, None] * rot

    mean = np.zeros((QKD, QKD), np.float32)              # block-diag 1/HEAD_DIM
    for hd in range(NUM_QK_HEADS):
        o = hd * HEAD_DIM
        mean[o:o + HEAD_DIM, o:o + HEAD_DIM] = 1.0 / HEAD_DIM

    nh_rows = NUM_HEADS * rows                           # per-head row-sum matrix
    ones_bd = np.zeros((nh_rows, nh_rows), np.float32)
    for hd in range(NUM_HEADS):
        o = hd * rows
        ones_bd[o:o + rows, o:o + rows] = 1.0

    tab = np.zeros((2 * QKD + nh_rows + 2 * rows, QKD), np.float32)
    tab[0:QKD] = rot
    tab[QKD:2 * QKD] = mean
    tab[2 * QKD:2 * QKD + nh_rows, :nh_rows] = ones_bd
    tab[2 * QKD + nh_rows:2 * QKD + nh_rows + rows] = cos_t
    tab[2 * QKD + nh_rows + rows:] = sin_t
    return jnp.asarray(tab)


def _build_mask_slab(mask_2d, rows, batches_per_block):
    """(S,S) additive mask -> (rows, NUM_HEADS*rows): block-diag over the
    batches folded into this block, tiled lane-wise per head."""
    m = np.asarray(mask_2d, np.float32)
    base = np.full((rows, rows), MASK_VALUE, np.float32)
    for b in range(batches_per_block):
        base[b * SEQ:(b + 1) * SEQ, b * SEQ:(b + 1) * SEQ] = m
    return jnp.asarray(np.tile(base, (1, NUM_HEADS)))


def _default_batch_blocks():
    # v7x has 2 TensorCores per chip: split the folded rows into two "parallel"
    # blocks there; keep the fully folded grid=(1,) on single-TC v5e/v6e.
    try:
        kind = jax.devices()[0].device_kind.lower()
    except Exception:
        return 1
    return BATCH if ("v7" in kind or "7x" in kind) else 1


# ------------------------------ wrapper --------------------------------------
def gemma3_decoder_layer(x, cos, sin, mask_2d, params, *, batch_blocks=None,
                         matmul_dtype=jnp.float32):
    (ln_in, ln_pa, ln_pf, ln_pof, qn, kn, wq, wk, wv, wo, wg, wu, wd) = params

    if batch_blocks is None:
        batch_blocks = _default_batch_blocks()
    assert BATCH % batch_blocks == 0
    batches_per_block = BATCH // batch_blocks
    rows = batches_per_block * SEQ

    # one-time parameter / constant packing (layout plumbing only) — 6 operands
    # total (was 18): x, mask, ln, tables, w_in, w_out.
    ln_pack = 1.0 + jnp.concatenate([ln_in, ln_pa, ln_pf, ln_pof], axis=0)    # (4, H)
    w_in = jnp.concatenate(
        [jnp.concatenate([wq, wk, wv], axis=1),          # (H, 128) fused q|k|v
         jnp.concatenate([wg, wu], axis=1)],             # (H, 128) fused gate|up
        axis=0).astype(matmul_dtype)                     # (2H, 128)
    w_out = jnp.concatenate([wo, wd], axis=1).astype(matmul_dtype)            # (64, 64)
    tables = _build_tables(cos, sin, qn, kn, rows, batches_per_block)
    mask_slab = _build_mask_slab(mask_2d, rows, batches_per_block)
    x2d = x.reshape(BS, HIDDEN)                          # fold batch into rows

    def const_spec(shape):
        n = len(shape)
        return pl.BlockSpec(shape, lambda i, _n=n: (0,) * _n)

    operands = (x2d, mask_slab, ln_pack, tables, w_in, w_out)
    in_specs = [pl.BlockSpec((rows, HIDDEN), lambda i: (i, 0))]
    in_specs += [const_spec(op.shape) for op in operands[1:]]

    out2d = pl.pallas_call(
        _make_kernel(rows, matmul_dtype),
        out_shape=jax.ShapeDtypeStruct((BS, HIDDEN), jnp.float32),
        grid_spec=pltpu.PrefetchScalarGridSpec(
            num_scalar_prefetch=0,
            grid=(batch_blocks,),
            in_specs=in_specs,
            out_specs=pl.BlockSpec((rows, HIDDEN), lambda i: (i, 0)),
        ),
        compiler_params=pltpu.CompilerParams(
            dimension_semantics=("parallel",) if batch_blocks > 1 else ("arbitrary",)),
    )(*operands)
    return out2d.reshape(BATCH, SEQ, HIDDEN)


# ------------------------- pure-JAX reference --------------------------------
def reference(x, cos, sin, mask, params, gemm_dtype=jnp.float32):
    """fp32 reference; with gemm_dtype=bf16 it mirrors the kernel's
    bf16-at-dot-boundary casts (fp32 accumulate) for a calibrated check."""
    (ln_in, ln_pa, ln_pf, ln_pof, qn, kn, wq, wk, wv, wo, wg, wu, wd) = params
    HI = lax.Precision.HIGHEST
    gd = gemm_dtype

    def dot(a, b):
        return jnp.dot(a.astype(gd), b.astype(gd), precision=HI,
                       preferred_element_type=jnp.float32)

    def rms(t, w):
        var = jnp.mean(t * t, axis=-1, keepdims=True)
        return t * lax.rsqrt(var + EPS) * (1.0 + w)

    def roth(t):
        d = t.shape[-1] // 2
        return jnp.concatenate([-t[..., d:], t[..., :d]], axis=-1)

    B = x.shape[0]
    residual = x
    h = rms(x, ln_in)
    q = dot(h, wq).reshape(B, SEQ, NUM_HEADS, HEAD_DIM).transpose(0, 2, 1, 3)
    k = dot(h, wk).reshape(B, SEQ, NUM_KV_HEADS, HEAD_DIM).transpose(0, 2, 1, 3)
    v = dot(h, wv).reshape(B, SEQ, NUM_KV_HEADS, HEAD_DIM).transpose(0, 2, 1, 3)
    q = rms(q, qn)
    k = rms(k, kn)
    c, s = cos[None, None], sin[None, None]
    q = q * c + roth(q) * s
    k = k * c + roth(k) * s
    k = jnp.repeat(k, GROUPS, axis=1)
    v = jnp.repeat(v, GROUPS, axis=1)
    scores = jnp.einsum('bhqd,bhkd->bhqk', q.astype(gd), k.astype(gd),
                        precision=HI, preferred_element_type=jnp.float32)
    scores = scores * SCALING + mask[None, None]
    p = jax.nn.softmax(scores, axis=-1)
    o = jnp.einsum('bhqk,bhkd->bhqd', p.astype(gd), v.astype(gd),
                   precision=HI, preferred_element_type=jnp.float32)
    o = dot(o.transpose(0, 2, 1, 3).reshape(B, SEQ, NUM_HEADS * HEAD_DIM), wo)
    h = residual + rms(o, ln_pa)
    residual = h
    hn = rms(h, ln_pf)
    gate = dot(hn, wg)
    up = dot(hn, wu)
    mlp = dot(jax.nn.gelu(gate, approximate=True) * up, wd)
    return residual + rms(mlp, ln_pof)


# --------------------------------- main --------------------------------------
if __name__ == "__main__":
    key = jax.random.PRNGKey(0)
    keys = jax.random.split(key, 20)

    def init(k, shape, scale=0.02):
        return scale * jax.random.normal(k, shape, dtype=jnp.float32)

    # RMSNorm weights (Gemma initializes to zeros; small values so they matter)
    ln_in = init(keys[0], (1, HIDDEN), 0.1)
    ln_pa = init(keys[1], (1, HIDDEN), 0.1)
    ln_pf = init(keys[2], (1, HIDDEN), 0.1)
    ln_pof = init(keys[3], (1, HIDDEN), 0.1)
    qn = init(keys[4], (1, HEAD_DIM), 0.1)
    kn = init(keys[5], (1, HEAD_DIM), 0.1)
    # projection weights stored as (in, out) so the kernel does x @ W
    wq = init(keys[6], (HIDDEN, NUM_HEADS * HEAD_DIM))
    wk = init(keys[7], (HIDDEN, NUM_KV_HEADS * HEAD_DIM))
    wv = init(keys[8], (HIDDEN, NUM_KV_HEADS * HEAD_DIM))
    wo = init(keys[9], (NUM_HEADS * HEAD_DIM, HIDDEN))
    wg = init(keys[10], (HIDDEN, INTERMEDIATE))
    wu = init(keys[11], (HIDDEN, INTERMEDIATE))
    wd = init(keys[12], (INTERMEDIATE, HIDDEN))
    params = (ln_in, ln_pa, ln_pf, ln_pof, qn, kn, wq, wk, wv, wo, wg, wu, wd)

    x = jax.random.normal(keys[13], (BATCH, SEQ, HIDDEN), dtype=jnp.float32)

    # RoPE tables (local base freq because this layer is sliding, like the module)
    base = ROPE_LOCAL_BASE_FREQ if IS_SLIDING else ROPE_THETA_GLOBAL
    cos_np, sin_np = _rope_cos_sin(base)
    cos = jnp.asarray(cos_np)
    sin = jnp.asarray(sin_np)

    # Additive causal mask + sliding-window preprocessing from forward().
    # MASK_VALUE is a finite stand-in for torch.finfo(dtype).min (same softmax).
    i = np.arange(SEQ)[:, None]
    j = np.arange(SEQ)[None, :]
    mask_np = np.where(j <= i, 0.0, MASK_VALUE).astype(np.float32)
    if IS_SLIDING:
        effective_seq_len = max(SEQ, SLIDING_WINDOW)      # cache_position.shape[0] = SEQ
        swm = (j <= i - SLIDING_WINDOW)                   # tril(ones, diag=-sliding_window)
        mask_np = np.where(swm, MASK_VALUE, mask_np).astype(np.float32)
        offset = max(0, SEQ - effective_seq_len)          # last_cache_position = SEQ
        mask_np = mask_np[:, offset:offset + effective_seq_len]
    mask = jnp.asarray(mask_np)

    ref_f32 = jax.block_until_ready(reference(x, cos, sin, mask, params))

    # 1) fp32 GEMMs, fully folded batch (grid=(1,)) — tight check now that the
    #    approx reciprocal is gone and the reference runs at HIGHEST precision.
    out = gemma3_decoder_layer(x, cos, sin, mask, params,
                               batch_blocks=1, matmul_dtype=jnp.float32)
    out = jax.block_until_ready(out)
    np.testing.assert_allclose(np.asarray(out), np.asarray(ref_f32),
                               rtol=2e-3, atol=2e-3)

    # 2) 2-way "parallel" grid over batch (the v7x two-TensorCore path).
    out_par = gemma3_decoder_layer(x, cos, sin, mask, params,
                                   batch_blocks=BATCH, matmul_dtype=jnp.float32)
    out_par = jax.block_until_ready(out_par)
    np.testing.assert_allclose(np.asarray(out_par), np.asarray(ref_f32),
                               rtol=2e-3, atol=2e-3)

    # 3) bf16 GEMM operands (fp32 accumulate), elementwise kept fp32; compared
    #    against a reference with the same bf16-at-dot-boundary casts so the
    #    bound stays calibrated (only rare bf16 rounding flips differ).
    ref_bf16 = jax.block_until_ready(
        reference(x, cos, sin, mask, params, gemm_dtype=jnp.bfloat16))
    out_bf16 = gemma3_decoder_layer(x, cos, sin, mask, params,
                                    batch_blocks=_default_batch_blocks(),
                                    matmul_dtype=jnp.bfloat16)
    out_bf16 = jax.block_until_ready(out_bf16)
    np.testing.assert_allclose(np.asarray(out_bf16), np.asarray(ref_bf16),
                               rtol=1e-2, atol=1e-2)

    print("KERNEL_OK")
</pallas_src>

<mosaic_0001>
module attributes {stable_mosaic.version = 11 : i64} {
  func.func @kernel(%arg0: i32, %arg1: memref<16x32xf32, #tpu.memory_space<vmem>>, %arg2: memref<16x64xf32, #tpu.memory_space<vmem>>, %arg3: memref<4x32xf32, #tpu.memory_space<vmem>>, %arg4: memref<288x96xf32, #tpu.memory_space<vmem>>, %arg5: memref<64x128xf32, #tpu.memory_space<vmem>>, %arg6: memref<64x64xf32, #tpu.memory_space<vmem>>, %arg7: memref<16x32xf32, #tpu.memory_space<vmem>>) attributes {dimension_semantics = [#tpu.dimension_semantics<arbitrary>], iteration_bounds = array<i64: 1>, scalar_prefetch = 0 : i64, scratch_operands = 0 : i64, tpu.core_type = #tpu.core_type<tc>, window_params = [{transform_indices = @transform_0, window_bounds = array<i64: 16, 32>}, {pipeline_mode = #tpu.pipeline_mode<synchronous>, transform_indices = @transform_1, window_bounds = array<i64: 16, 64>}, {pipeline_mode = #tpu.pipeline_mode<synchronous>, transform_indices = @transform_2, window_bounds = array<i64: 4, 32>}, {pipeline_mode = #tpu.pipeline_mode<synchronous>, transform_indices = @transform_3, window_bounds = array<i64: 288, 96>}, {pipeline_mode = #tpu.pipeline_mode<synchronous>, transform_indices = @transform_4, window_bounds = array<i64: 64, 128>}, {pipeline_mode = #tpu.pipeline_mode<synchronous>, transform_indices = @transform_5, window_bounds = array<i64: 64, 64>}, {transform_indices = @transform_6, window_bounds = array<i64: 16, 32>}]} {
    %c0 = arith.constant 0 : index
    %c0_0 = arith.constant 0 : index
    %0 = vector.load %arg1[%c0, %c0_0] : memref<16x32xf32, #tpu.memory_space<vmem>>, vector<16x32xf32>
    %c0_1 = arith.constant 0 : index
    %c0_2 = arith.constant 0 : index
    %1 = vector.load %arg3[%c0_1, %c0_2] : memref<4x32xf32, #tpu.memory_space<vmem>>, vector<4x32xf32>
    %c0_3 = arith.constant 0 : index
    %c0_4 = arith.constant 0 : index
    %2 = vector.load %arg4[%c0_3, %c0_4] : memref<288x96xf32, #tpu.memory_space<vmem>>, vector<288x96xf32>
    %c0_5 = arith.constant 0 : index
    %c0_6 = arith.constant 0 : index
    %3 = vector.load %arg5[%c0_5, %c0_6] : memref<64x128xf32, #tpu.memory_space<vmem>>, vector<64x128xf32>
    %c0_7 = arith.constant 0 : index
    %c0_8 = arith.constant 0 : index
    %4 = vector.load %arg6[%c0_7, %c0_8] : memref<64x64xf32, #tpu.memory_space<vmem>>, vector<64x64xf32>
    %5 = vector.extract_strided_slice %2 {offsets = [0, 0], sizes = [96, 96], strides = [1, 1]} : vector<288x96xf32> to vector<96x96xf32>
    %6 = vector.extract_strided_slice %2 {offsets = [96, 0], sizes = [96, 96], strides = [1, 1]} : vector<288x96xf32> to vector<96x96xf32>
    %7 = vector.extract_strided_slice %2 {offsets = [192, 0], sizes = [64, 64], strides = [1, 1]} : vector<288x96xf32> to vector<64x64xf32>
    %8 = vector.extract_strided_slice %2 {offsets = [256, 0], sizes = [16, 96], strides = [1, 1]} : vector<288x96xf32> to vector<16x96xf32>
    %9 = vector.extract_strided_slice %2 {offsets = [272, 0], sizes = [16, 96], strides = [1, 1]} : vector<288x96xf32> to vector<16x96xf32>
    %10 = vector.extract_strided_slice %1 {offsets = [0, 0], sizes = [1, 32], strides = [1, 1]} : vector<4x32xf32> to vector<1x32xf32>
    %11 = arith.mulf %0, %0 : vector<16x32xf32>
    %cst = arith.constant dense<0.000000e+00> : vector<16xf32>
    %12 = vector.multi_reduction <add>, %11, %cst [1] : vector<16x32xf32> to vector<16xf32>
    %13 = vector.shape_cast %12 : vector<16xf32> to vector<16x1xf32>
    %cst_9 = arith.constant 3.200000e+01 : f32
    %14 = vector.broadcast %cst_9 : f32 to vector<16x1xf32>
    %15 = arith.divf %13, %14 : vector<16x1xf32>
    %cst_10 = arith.constant 9.99999997E-7 : f32
    %16 = vector.broadcast %cst_10 : f32 to vector<16x1xf32>
    %17 = arith.addf %15, %16 : vector<16x1xf32>
    %18 = math.rsqrt %17 : vector<16x1xf32>
    %19 = vector.broadcast %18 : vector<16x1xf32> to vector<16x32xf32>
    %20 = arith.mulf %0, %19 : vector<16x32xf32>
    %21 = vector.broadcast %10 : vector<1x32xf32> to vector<16x32xf32>
    %22 = arith.mulf %20, %21 : vector<16x32xf32>
    %23 = vector.extract_strided_slice %3 {offsets = [0, 0], sizes = [32, 128], strides = [1, 1]} : vector<64x128xf32> to vector<32x128xf32>
    %cst_11 = arith.constant dense<0.000000e+00> : vector<16x128xf32>
    %24 = tpu.matmul %22, %23, %cst_11 {dimension_numbers = #tpu.dot_dimension_numbers<[1], [0], [0], [1], [0, 0, 1, 1], [], []>} : vector<16x32xf32>, vector<32x128xf32>, vector<16x128xf32> -> vector<16x128xf32>
    %25 = vector.extract_strided_slice %24 {offsets = [0, 0], sizes = [16, 96], strides = [1, 1]} : vector<16x128xf32> to vector<16x96xf32>
    %26 = vector.extract_strided_slice %24 {offsets = [0, 96], sizes = [16, 32], strides = [1, 1]} : vector<16x128xf32> to vector<16x32xf32>
    %27 = arith.mulf %25, %25 : vector<16x96xf32>
    %cst_12 = arith.constant dense<0.000000e+00> : vector<16x96xf32>
    %28 = tpu.matmul %27, %6, %cst_12 {dimension_numbers = #tpu.dot_dimension_numbers<[1], [0], [0], [1], [0, 0, 1, 1], [], []>} : vector<16x96xf32>, vector<96x96xf32>, vector<16x96xf32> -> vector<16x96xf32>
    %cst_13 = arith.constant 9.99999997E-7 : f32
    %29 = vector.broadcast %cst_13 : f32 to vector<16x96xf32>
    %30 = arith.addf %28, %29 : vector<16x96xf32>
    %31 = math.rsqrt %30 : vector<16x96xf32>
    %32 = arith.mulf %25, %31 : vector<16x96xf32>
    %33 = arith.mulf %32, %8 : vector<16x96xf32>
    %cst_14 = arith.constant dense<0.000000e+00> : vector<16x96xf32>
    %34 = tpu.matmul %32, %5, %cst_14 {dimension_numbers = #tpu.dot_dimension_numbers<[1], [0], [0], [1], [0, 0, 1, 1], [], []>} : vector<16x96xf32>, vector<96x96xf32>, vector<16x96xf32> -> vector<16x96xf32>
    %35 = arith.mulf %34, %9 : vector<16x96xf32>
    %36 = arith.addf %33, %35 : vector<16x96xf32>
    %37 = vector.extract_strided_slice %36 {offsets = [0, 0], sizes = [16, 64], strides = [1, 1]} : vector<16x96xf32> to vector<16x64xf32>
    %38 = vector.extract_strided_slice %36 {offsets = [0, 64], sizes = [16, 32], strides = [1, 1]} : vector<16x96xf32> to vector<16x32xf32>
    %39 = vector.extract_strided_slice %37 {offsets = [0, 0], sizes = [16, 16], strides = [1, 1]} : vector<16x64xf32> to vector<16x16xf32>
    %40 = vector.extract_strided_slice %38 {offsets = [0, 0], sizes = [16, 16], strides = [1, 1]} : vector<16x32xf32> to vector<16x16xf32>
    %cst_15 = arith.constant dense<0.000000e+00> : vector<16x16xf32>
    %41 = tpu.matmul %39, %40, %cst_15 {dimension_numbers = #tpu.dot_dimension_numbers<[1], [1], [0], [0], [0, 0, 1, 0], [], []>} : vector<16x16xf32>, vector<16x16xf32>, vector<16x16xf32> -> vector<16x16xf32>
    %42 = vector.extract_strided_slice %37 {offsets = [0, 16], sizes = [16, 16], strides = [1, 1]} : vector<16x64xf32> to vector<16x16xf32>
    %43 = vector.extract_strided_slice %38 {offsets = [0, 0], sizes = [16, 16], strides = [1, 1]} : vector<16x32xf32> to vector<16x16xf32>
    %cst_16 = arith.constant dense<0.000000e+00> : vector<16x16xf32>
    %44 = tpu.matmul %42, %43, %cst_16 {dimension_numbers = #tpu.dot_dimension_numbers<[1], [1], [0], [0], [0, 0, 1, 0], [], []>} : vector<16x16xf32>, vector<16x16xf32>, vector<16x16xf32> -> vector<16x16xf32>
    %45 = vector.extract_strided_slice %37 {offsets = [0, 32], sizes = [16, 16], strides = [1, 1]} : vector<16x64xf32> to vector<16x16xf32>
    %46 = vector.extract_strided_slice %38 {offsets = [0, 16], sizes = [16, 16], strides = [1, 1]} : vector<16x32xf32> to vector<16x16xf32>
    %cst_17 = arith.constant dense<0.000000e+00> : vector<16x16xf32>
    %47 = tpu.matmul %45, %46, %cst_17 {dimension_numbers = #tpu.dot_dimension_numbers<[1], [1], [0], [0], [0, 0, 1, 0], [], []>} : vector<16x16xf32>, vector<16x16xf32>, vector<16x16xf32> -> vector<16x16xf32>
    %48 = vector.extract_strided_slice %37 {offsets = [0, 48], sizes = [16, 16], strides = [1, 1]} : vector<16x64xf32> to vector<16x16xf32>
    %49 = vector.extract_strided_slice %38 {offsets = [0, 16], sizes = [16, 16], strides = [1, 1]} : vector<16x32xf32> to vector<16x16xf32>
    %cst_18 = arith.constant dense<0.000000e+00> : vector<16x16xf32>
    %50 = tpu.matmul %48, %49, %cst_18 {dimension_numbers = #tpu.dot_dimension_numbers<[1], [1], [0], [0], [0, 0, 1, 0], [], []>} : vector<16x16xf32>, vector<16x16xf32>, vector<16x16xf32> -> vector<16x16xf32>
    %51 = tpu.concatenate %41, %44, %47, %50 in 1 : vector<16x16xf32>, vector<16x16xf32>, vector<16x16xf32>, vector<16x16xf32> -> vector<16x64xf32>
    %cst_19 = arith.constant 2.500000e-01 : f32
    %52 = vector.broadcast %cst_19 : f32 to vector<16x64xf32>
    %53 = arith.mulf %51, %52 : vector<16x64xf32>
    %c0_20 = arith.constant 0 : index
    %c0_21 = arith.constant 0 : index
    %54 = vector.load %arg2[%c0_20, %c0_21] : memref<16x64xf32, #tpu.memory_space<vmem>>, vector<16x64xf32>
    %55 = arith.addf %53, %54 : vector<16x64xf32>
    %cst_22 = arith.constant dense<0xFF800000> : vector<16xf32>
    %56 = vector.multi_reduction <maximumf>, %55, %cst_22 [1] : vector<16x64xf32> to vector<16xf32>
    %57 = vector.shape_cast %56 : vector<16xf32> to vector<16x1xf32>
    %58 = vector.broadcast %57 : vector<16x1xf32> to vector<16x64xf32>
    %59 = arith.subf %55, %58 : vector<16x64xf32>
    %60 = math.exp %59 : vector<16x64xf32>
    %cst_23 = arith.constant dense<0.000000e+00> : vector<16x64xf32>
    %61 = tpu.matmul %60, %7, %cst_23 {dimension_numbers = #tpu.dot_dimension_numbers<[1], [0], [0], [1], [0, 0, 1, 1], [], []>} : vector<16x64xf32>, vector<64x64xf32>, vector<16x64xf32> -> vector<16x64xf32>
    %62 = arith.divf %60, %61 : vector<16x64xf32>
    %63 = vector.extract_strided_slice %62 {offsets = [0, 0], sizes = [16, 16], strides = [1, 1]} : vector<16x64xf32> to vector<16x16xf32>
    %64 = vector.extract_strided_slice %26 {offsets = [0, 0], sizes = [16, 16], strides = [1, 1]} : vector<16x32xf32> to vector<16x16xf32>
    %cst_24 = arith.constant dense<0.000000e+00> : vector<16x16xf32>
    %65 = tpu.matmul %63, %64, %cst_24 {dimension_numbers = #tpu.dot_dimension_numbers<[1], [0], [0], [1], [0, 0, 1, 1], [], []>} : vector<16x16xf32>, vector<16x16xf32>, vector<16x16xf32> -> vector<16x16xf32>
    %66 = vector.extract_strided_slice %62 {offsets = [0, 16], sizes = [16, 16], strides = [1, 1]} : vector<16x64xf32> to vector<16x16xf32>
    %67 = vector.extract_strided_slice %26 {offsets = [0, 0], sizes = [16, 16], strides = [1, 1]} : vector<16x32xf32> to vector<16x16xf32>
    %cst_25 = arith.constant dense<0.000000e+00> : vector<16x16xf32>
    %68 = tpu.matmul %66, %67, %cst_25 {dimension_numbers = #tpu.dot_dimension_numbers<[1], [0], [0], [1], [0, 0, 1, 1], [], []>} : vector<16x16xf32>, vector<16x16xf32>, vector<16x16xf32> -> vector<16x16xf32>
    %69 = vector.extract_strided_slice %62 {offsets = [0, 32], sizes = [16, 16], strides = [1, 1]} : vector<16x64xf32> to vector<16x16xf32>
    %70 = vector.extract_strided_slice %26 {offsets = [0, 16], sizes = [16, 16], strides = [1, 1]} : vector<16x32xf32> to vector<16x16xf32>
    %cst_26 = arith.constant dense<0.000000e+00> : vector<16x16xf32>
    %71 = tpu.matmul %69, %70, %cst_26 {dimension_numbers = #tpu.dot_dimension_numbers<[1], [0], [0], [1], [0, 0, 1, 1], [], []>} : vector<16x16xf32>, vector<16x16xf32>, vector<16x16xf32> -> vector<16x16xf32>
    %72 = vector.extract_strided_slice %62 {offsets = [0, 48], sizes = [16, 16], strides = [1, 1]} : vector<16x64xf32> to vector<16x16xf32>
    %73 = vector.extract_strided_slice %26 {offsets = [0, 16], sizes = [16, 16], strides = [1, 1]} : vector<16x32xf32> to vector<16x16xf32>
    %cst_27 = arith.constant dense<0.000000e+00> : vector<16x16xf32>
    %74 = tpu.matmul %72, %73, %cst_27 {dimension_numbers = #tpu.dot_dimension_numbers<[1], [0], [0], [1], [0, 0, 1, 1], [], []>} : vector<16x16xf32>, vector<16x16xf32>, vector<16x16xf32> -> vector<16x16xf32>
    %75 = tpu.concatenate %65, %68, %71, %74 in 1 : vector<16x16xf32>, vector<16x16xf32>, vector<16x16xf32>, vector<16x16xf32> -> vector<16x64xf32>
    %76 = vector.extract_strided_slice %4 {offsets = [0, 0], sizes = [64, 32], strides = [1, 1]} : vector<64x64xf32> to vector<64x32xf32>
    %cst_28 = arith.constant dense<0.000000e+00> : vector<16x32xf32>
    %77 = tpu.matmul %75, %76, %cst_28 {dimension_numbers = #tpu.dot_dimension_numbers<[1], [0], [0], [1], [0, 0, 1, 1], [], []>} : vector<16x64xf32>, vector<64x32xf32>, vector<16x32xf32> -> vector<16x32xf32>
    %78 = vector.extract_strided_slice %1 {offsets = [1, 0], sizes = [1, 32], strides = [1, 1]} : vector<4x32xf32> to vector<1x32xf32>
    %79 = arith.mulf %77, %77 : vector<16x32xf32>
    %cst_29 = arith.constant dense<0.000000e+00> : vector<16xf32>
    %80 = vector.multi_reduction <add>, %79, %cst_29 [1] : vector<16x32xf32> to vector<16xf32>
    %81 = vector.shape_cast %80 : vector<16xf32> to vector<16x1xf32>
    %cst_30 = arith.constant 3.200000e+01 : f32
    %82 = vector.broadcast %cst_30 : f32 to vector<16x1xf32>
    %83 = arith.divf %81, %82 : vector<16x1xf32>
    %cst_31 = arith.constant 9.99999997E-7 : f32
    %84 = vector.broadcast %cst_31 : f32 to vector<16x1xf32>
    %85 = arith.addf %83, %84 : vector<16x1xf32>
    %86 = math.rsqrt %85 : vector<16x1xf32>
    %87 = vector.broadcast %86 : vector<16x1xf32> to vector<16x32xf32>
    %88 = arith.mulf %77, %87 : vector<16x32xf32>
    %89 = vector.broadcast %78 : vector<1x32xf32> to vector<16x32xf32>
    %90 = arith.mulf %88, %89 : vector<16x32xf32>
    %91 = arith.addf %0, %90 : vector<16x32xf32>
    %92 = vector.extract_strided_slice %1 {offsets = [2, 0], sizes = [1, 32], strides = [1, 1]} : vector<4x32xf32> to vector<1x32xf32>
    %93 = arith.mulf %91, %91 : vector<16x32xf32>
    %cst_32 = arith.constant dense<0.000000e+00> : vector<16xf32>
    %94 = vector.multi_reduction <add>, %93, %cst_32 [1] : vector<16x32xf32> to vector<16xf32>
    %95 = vector.shape_cast %94 : vector<16xf32> to vector<16x1xf32>
    %cst_33 = arith.constant 3.200000e+01 : f32
    %96 = vector.broadcast %cst_33 : f32 to vector<16x1xf32>
    %97 = arith.divf %95, %96 : vector<16x1xf32>
    %cst_34 = arith.constant 9.99999997E-7 : f32
    %98 = vector.broadcast %cst_34 : f32 to vector<16x1xf32>
    %99 = arith.addf %97, %98 : vector<16x1xf32>
    %100 = math.rsqrt %99 : vector<16x1xf32>
    %101 = vector.broadcast %100 : vector<16x1xf32> to vector<16x32xf32>
    %102 = arith.mulf %91, %101 : vector<16x32xf32>
    %103 = vector.broadcast %92 : vector<1x32xf32> to vector<16x32xf32>
    %104 = arith.mulf %102, %103 : vector<16x32xf32>
    %105 = vector.extract_strided_slice %3 {offsets = [32, 0], sizes = [32, 128], strides = [1, 1]} : vector<64x128xf32> to vector<32x128xf32>
    %cst_35 = arith.constant dense<0.000000e+00> : vector<16x128xf32>
    %106 = tpu.matmul %104, %105, %cst_35 {dimension_numbers = #tpu.dot_dimension_numbers<[1], [0], [0], [1], [0, 0, 1, 1], [], []>} : vector<16x32xf32>, vector<32x128xf32>, vector<16x128xf32> -> vector<16x128xf32>
    %107 = vector.extract_strided_slice %106 {offsets = [0, 0], sizes = [16, 64], strides = [1, 1]} : vector<16x128xf32> to vector<16x64xf32>
    %108 = vector.extract_strided_slice %106 {offsets = [0, 64], sizes = [16, 64], strides = [1, 1]} : vector<16x128xf32> to vector<16x64xf32>
    %109 = arith.mulf %107, %107 : vector<16x64xf32>
    %110 = arith.mulf %107, %109 : vector<16x64xf32>
    %cst_36 = arith.constant 4.471500e-02 : f32
    %111 = vector.broadcast %cst_36 : f32 to vector<16x64xf32>
    %112 = arith.mulf %111, %110 : vector<16x64xf32>
    %113 = arith.addf %107, %112 : vector<16x64xf32>
    %cst_37 = arith.constant 0.797884583 : f32
    %114 = vector.broadcast %cst_37 : f32 to vector<16x64xf32>
    %115 = arith.mulf %114, %113 : vector<16x64xf32>
    %116 = math.tanh %115 : vector<16x64xf32>
    %cst_38 = arith.constant 1.000000e+00 : f32
    %117 = vector.broadcast %cst_38 : f32 to vector<16x64xf32>
    %118 = arith.addf %117, %116 : vector<16x64xf32>
    %cst_39 = arith.constant 5.000000e-01 : f32
    %119 = vector.broadcast %cst_39 : f32 to vector<16x64xf32>
    %120 = arith.mulf %119, %118 : vector<16x64xf32>
    %121 = arith.mulf %107, %120 : vector<16x64xf32>
    %122 = arith.mulf %121, %108 : vector<16x64xf32>
    %123 = vector.extract_strided_slice %4 {offsets = [0, 32], sizes = [64, 32], strides = [1, 1]} : vector<64x64xf32> to vector<64x32xf32>
    %cst_40 = arith.constant dense<0.000000e+00> : vector<16x32xf32>
    %124 = tpu.matmul %122, %123, %cst_40 {dimension_numbers = #tpu.dot_dimension_numbers<[1], [0], [0], [1], [0, 0, 1, 1], [], []>} : vector<16x64xf32>, vector<64x32xf32>, vector<16x32xf32> -> vector<16x32xf32>
    %125 = vector.extract_strided_slice %1 {offsets = [3, 0], sizes = [1, 32], strides = [1, 1]} : vector<4x32xf32> to vector<1x32xf32>
    %126 = arith.mulf %124, %124 : vector<16x32xf32>
    %cst_41 = arith.constant dense<0.000000e+00> : vector<16xf32>
    %127 = vector.multi_reduction <add>, %126, %cst_41 [1] : vector<16x32xf32> to vector<16xf32>
    %128 = vector.shape_cast %127 : vector<16xf32> to vector<16x1xf32>
    %cst_42 = arith.constant 3.200000e+01 : f32
    %129 = vector.broadcast %cst_42 : f32 to vector<16x1xf32>
    %130 = arith.divf %128, %129 : vector<16x1xf32>
    %cst_43 = arith.constant 9.99999997E-7 : f32
    %131 = vector.broadcast %cst_43 : f32 to vector<16x1xf32>
    %132 = arith.addf %130, %131 : vector<16x1xf32>
    %133 = math.rsqrt %132 : vector<16x1xf32>
    %134 = vector.broadcast %133 : vector<16x1xf32> to vector<16x32xf32>
    %135 = arith.mulf %124, %134 : vector<16x32xf32>
    %136 = vector.broadcast %125 : vector<1x32xf32> to vector<16x32xf32>
    %137 = arith.mulf %135, %136 : vector<16x32xf32>
    %138 = arith.addf %91, %137 : vector<16x32xf32>
    %c0_44 = arith.constant 0 : index
    %c0_45 = arith.constant 0 : index
    %139 = vector.load %arg7[%c0_44, %c0_45] : memref<16x32xf32, #tpu.memory_space<vmem>>, vector<16x32xf32>
    tpu.vector_store %arg7[%c0_44, %c0_45], %138 {strides = array<i32>} : memref<16x32xf32, #tpu.memory_space<vmem>>, vector<16x32xf32>,
    return
  }
  func.func @transform_0(%arg0: i32) -> (i32, i32) {
    %c0_i32 = arith.constant 0 : i32
    %c0_i32_0 = arith.constant 0 : i32
    return %arg0, %c0_i32 : i32, i32
  }
  func.func @transform_1(%arg0: i32) -> (i32, i32) {
    %c0_i32 = arith.constant 0 : i32
    %c0_i32_0 = arith.constant 0 : i32
    %c0_i32_1 = arith.constant 0 : i32
    return %c0_i32, %c0_i32_0 : i32, i32
  }
  func.func @transform_2(%arg0: i32) -> (i32, i32) {
    %c0_i32 = arith.constant 0 : i32
    %c0_i32_0 = arith.constant 0 : i32
    %c0_i32_1 = arith.constant 0 : i32
    return %c0_i32, %c0_i32_0 : i32, i32
  }
  func.func @transform_3(%arg0: i32) -> (i32, i32) {
    %c0_i32 = arith.constant 0 : i32
    %c0_i32_0 = arith.constant 0 : i32
    %c0_i32_1 = arith.constant 0 : i32
    return %c0_i32, %c0_i32_0 : i32, i32
  }
  func.func @transform_4(%arg0: i32) -> (i32, i32) {
    %c0_i32 = arith.constant 0 : i32
    %c0_i32_0 = arith.constant 0 : i32
    %c0_i32_1 = arith.constant 0 : i32
    return %c0_i32, %c0_i32_0 : i32, i32
  }
  func.func @transform_5(%arg0: i32) -> (i32, i32) {
    %c0_i32 = arith.constant 0 : i32
    %c0_i32_0 = arith.constant 0 : i32
    %c0_i32_1 = arith.constant 0 : i32
    return %c0_i32, %c0_i32_0 : i32, i32
  }
  func.func @transform_6(%arg0: i32) -> (i32, i32) {
    %c0_i32 = arith.constant 0 : i32
    %c0_i32_0 = arith.constant 0 : i32
    return %arg0, %c0_i32 : i32, i32
  }
}

</mosaic_0001>

<bundles_post_ra>
// kernel: tpu_custom_call.1
= control target key start
LH: loop header
LB: loop body
LE: loop exit
PB: predicated region body
PF: predicated region fallthrough
CT: control target
= control target key end

     0   :  { %11 = vsyncpa [#allocation3], 0  ;;  %s2724_s0 = inlined_call_operand.hbm [shape: f32[16,32], index: 0, kind: input, shape index: {}]   ;;  %s2725_s1 = inlined_call_operand.hbm [shape: f32[16,64], index: 1, kind: input, shape index: {}]   ;;  %s2726_s2 = inlined_call_operand.vmem [shape: f32[4,32], index: 2, kind: input, shape index: {}]   ;;  %s2727_s3 = inlined_call_operand.hbm [shape: f32[288,96], index: 3, kind: input, shape index: {}]   ;;  %s2728_s4 = inlined_call_operand.hbm [shape: f32[64,128], index: 4, kind: input, shape index: {}]   ;;  %s2729_s5 = inlined_call_operand.hbm [shape: f32[64,64], index: 5, kind: input, shape index: {}]   ;;  %s2730_s6 = inlined_call_operand.hbm [shape: f32[16,32], index: 6, kind: output, shape index: {}]  }
   0x1   :  { %12 = vsyncpa [#allocation6], 0 }
   0x2   :  { %13 = vsyncpa [#allocation9], 0 }
   0x3   :  { %14 = vsyncpa [#allocation4], 0  ;;  %s2385_s21 = smov [#allocation5]   ;;  %s2386_s23 = smov [#allocation8]  }
   0x4   :  { %s32_s22 = sshll.u32 %s2385_s21, 4  ;;  %s58_s24 = sshll.u32 %s2386_s23, 4  ;;  %s33_s22 = int_to_ptr.vmem [resolvable:$true] %s32_s22  ;;  %s2435_s24 = int_to_ptr.vmem [resolvable:$true] %s58_s24 }
   0x5   :  { %s2245_s27 = scalar_lea.hbm %s2725_s1, 256 }
   0x6   :  { %p2246_p0 = scmp.ne.s32.totalorder %s2725_s1, %s2245_s27  ;;  %p2249_p1 = scmp.lt.u32.totalorder %s2245_s27, %s2725_s1 }
   0x8   :  { %p2251_p2 = pnand %p2249_p1, %p2246_p0 }
   0xa   :  { %2254 = shalt.err (!%p2251_p2)
}
   0xb   :  { %s2255_s8 = scalar_lea.vmem %s33_s22, 256  ;;  %p2260_p4 = scmp.lt.s32.totalorder %s33_s22, %s33_s22 }
   0xc   :  { %p2256_p3 = scmp.ne.s32.totalorder %s33_s22, %s2255_s8  ;;  %p2261_p5 = scmp.lt.s32.totalorder %s2255_s8, %s2255_s8 }
   0xe   :  { %p2262_p6 = por %p2261_p5, %p2260_p4 }
  0x10   :  { %p2263_p7 = pnand %p2262_p6, %p2256_p3 }
  0x12   :  { %2266 = shalt.err (!%p2263_p7)
}
  0x13   :  { %s2387_s9 = smov 128   ;;  %s2388_s10 = smov 8  }
  0x14   :  { %38 = dma.hbm_to_vmem [thread:$0]  %s2725_s1, 256, %s33_s22, [#allocation6], %s2387_s9, %s2387_s9, %s2388_s10  }
  0x15   :  { %s2267_s15 = scalar_lea.hbm %s2728_s4, 1024 }
  0x16   :  { %p2268_p8 = scmp.ne.s32.totalorder %s2728_s4, %s2267_s15  ;;  %p2271_p9 = scmp.lt.u32.totalorder %s2267_s15, %s2728_s4 }
  0x18   :  { %p2273_p10 = pnand %p2271_p9, %p2268_p8 }
  0x1a   :  { %2276 = shalt.err (!%p2273_p10)
}
  0x1b   :  { %s2277_s20 = scalar_lea.vmem %s2435_s24, 1024  ;;  %p2282_p12 = scmp.lt.s32.totalorder %s2435_s24, %s2435_s24 }
  0x1c   :  { %p2278_p11 = scmp.ne.s32.totalorder %s2435_s24, %s2277_s20  ;;  %p2283_p13 = scmp.lt.s32.totalorder %s2277_s20, %s2277_s20 }
  0x1e   :  { %p2284_p0 = por %p2283_p13, %p2282_p12 }
  0x20   :  { %p2285_p1 = pnand %p2284_p0, %p2278_p11 }
  0x22   :  { %2288 = shalt.err (!%p2285_p1)
}
  0x23   :  { %64 = dma.hbm_to_vmem [thread:$0]  %s2728_s4, 1024, %s2435_s24, [#allocation9], %s2387_s9, %s2387_s9, %s2388_s10  }
  0x24   :  { %s2389_s22 = smov [#allocation2]   ;;  %s2390_s25 = smov [#allocation7]  }
  0x25   :  { %s20_s23 = sshll.u32 %s2389_s22, 4  ;;  %s46_s26 = sshll.u32 %s2390_s25, 4  ;;  %s21_s23 = int_to_ptr.vmem [resolvable:$true] %s20_s23  ;;  %s2472_s26 = int_to_ptr.vmem [resolvable:$true] %s46_s26 }
  0x26   :  { %s2289_s29 = scalar_lea.hbm %s2724_s0, 256 }
  0x27   :  { %p2290_p2 = scmp.ne.s32.totalorder %s2724_s0, %s2289_s29  ;;  %p2293_p3 = scmp.lt.u32.totalorder %s2289_s29, %s2724_s0 }
  0x29   :  { %p2295_p4 = pnand %p2293_p3, %p2290_p2 }
  0x2b   :  { %2298 = shalt.err (!%p2295_p4)
}
  0x2c   :  { %s2299_s4 = scalar_lea.vmem %s21_s23, 256  ;;  %p2304_p6 = scmp.lt.s32.totalorder %s21_s23, %s21_s23 }
  0x2d   :  { %p2300_p5 = scmp.ne.s32.totalorder %s21_s23, %s2299_s4  ;;  %p2305_p7 = scmp.lt.s32.totalorder %s2299_s4, %s2299_s4 }
  0x2f   :  { %p2306_p8 = por %p2305_p7, %p2304_p6 }
  0x31   :  { %p2307_p9 = pnand %p2306_p8, %p2300_p5 }
  0x33   :  { %2310 = shalt.err (!%p2307_p9)
}
  0x34   :  { %26 = dma.hbm_to_vmem [thread:$0]  %s2724_s0, 256, %s21_s23, [#allocation3], %s2387_s9, %s2387_s9, %s2388_s10  }
  0x35   :  { %s2311_s15 = scalar_lea.hbm %s2727_s3, 4608 }
  0x36   :  { %p2312_p10 = scmp.ne.s32.totalorder %s2727_s3, %s2311_s15  ;;  %p2315_p11 = scmp.lt.u32.totalorder %s2311_s15, %s2727_s3 }
  0x38   :  { %p2317_p12 = pnand %p2315_p11, %p2312_p10 }
  0x3a   :  { %2320 = shalt.err (!%p2317_p12)
}
  0x3b   :  { %s2321_s20 = scalar_lea.vmem %s2472_s26, 4608  ;;  %p2326_p0 = scmp.lt.s32.totalorder %s2472_s26, %s2472_s26 }
  0x3c   :  { %p2322_p13 = scmp.ne.s32.totalorder %s2472_s26, %s2321_s20  ;;  %p2327_p1 = scmp.lt.s32.totalorder %s2321_s20, %s2321_s20 }
  0x3e   :  { %p2328_p2 = por %p2327_p1, %p2326_p0 }
  0x40   :  { %p2329_p3 = pnand %p2328_p2, %p2322_p13 }
  0x42   :  { %2332 = shalt.err (!%p2329_p3)
}
  0x43   :  { %52 = dma.hbm_to_vmem [thread:$0]  %s2727_s3, 4608, %s2472_s26, [#allocation6], %s2387_s9, %s2387_s9, %s2388_s10  }
  0x44   :  { %s2391_s21 = smov [#allocation10]   ;;  %s2333_s27 = scalar_lea.hbm %s2729_s5, 1024 }
  0x45   :  { %s70_s22 = sshll.u32 %s2391_s21, 4  ;;  %p2334_p4 = scmp.ne.s32.totalorder %s2729_s5, %s2333_s27  ;;  %s71_s22 = int_to_ptr.vmem [resolvable:$true] %s70_s22 }
  0x46   :  { %p2337_p5 = scmp.lt.u32.totalorder %s2333_s27, %s2729_s5 }
  0x48   :  { %p2339_p6 = pnand %p2337_p5, %p2334_p4 }
  0x4a   :  { %2342 = shalt.err (!%p2339_p6)
}
  0x4b   :  { %s2343_s8 = scalar_lea.vmem %s71_s22, 1024  ;;  %p2348_p8 = scmp.lt.s32.totalorder %s71_s22, %s71_s22 }
  0x4c   :  { %p2344_p7 = scmp.ne.s32.totalorder %s71_s22, %s2343_s8  ;;  %p2349_p9 = scmp.lt.s32.totalorder %s2343_s8, %s2343_s8 }
  0x4e   :  { %p2350_p10 = por %p2349_p9, %p2348_p8 }
  0x50   :  { %p2351_p11 = pnand %p2350_p10, %p2344_p7 }
  0x52   :  { %2354 = shalt.err (!%p2351_p11)
}
  0x53   :  { %76 = dma.hbm_to_vmem [thread:$0]  %s2729_s5, 1024, %s71_s22, [#allocation9], %s2387_s9, %s2387_s9, %s2388_s10  }
  0x54   :  { %2377 = dma.done.wait [#allocation3], 256  }
  0x55   :  { %2378 = vsyncadd [#allocation3], 4294967040 }
  0x56   :  { %2379 = dma.done.wait [#allocation6], 4864  }
  0x57   :  { %2380 = vsyncadd [#allocation6], 4294962432 }
  0x58   :  { %2381 = dma.done.wait [#allocation9], 2048  }
  0x59   :  { %2382 = vsyncadd [#allocation9], 4294965248  ;;  %v2524_v0 = vld [vmem:[#allocation2] sm:$0xff]  ;;  %vm149_vm0 = vcmask 261120   ;;  %v2526_v1 = vld [vmem:[#allocation2 + $0x8] sm:$0xff]  ;;  %v165_v29 = vlaneseq  ;;  %vm254_vm1 = vcmask 785408  }
  0x5a   :  { %v147_v2 = vmul.f32 %v2524_v0, %v2524_v0  ;;  %v148_v3 = vmul.f32 %v2526_v1, %v2526_v1  ;;  %v131_v6 = vld [vmem:[#allocation8] sm:$0xff]  ;;  %v132_v7 = vld [vmem:[#allocation8 + $0x8] sm:$0xff]  ;;  %v133_v8 = vld [vmem:[#allocation8 + $0x10] sm:$0xff]  ;;  %vm433_vm2 = vcmask 130048   ;;  %s2393_s4 = smov 64   ;;  %s2394_s24 = smov 48  }
  0x5b   :  { %v2006_v9 = vpack.c.bf16 %v132_v7, %v131_v6  ;;  %v134_v10 = vld [vmem:[#allocation8 + $0x18] sm:$0xff]  ;;  %v107_v12 = vld [vmem:[#allocation7 + $0x60] sm:$0xff]  ;;  %v108_v13 = vld [vmem:[#allocation7 + $0x68] sm:$0xff]  ;;  %v2534_v33 = vshrl.u32 %v165_v29, 7  ;;  %s2395_s12 = smov 96   ;;  %s2396_s13 = smov 80  }
  0x5c   :  { %v150_v4 = vsel %vm149_vm0, %v147_v2, 0.0  ;;  %v153_v5 = vsel %vm149_vm0, %v148_v3, 0.0  ;;  %v2010_v11 = vpack.c.bf16 %v134_v10, %v133_v8  ;;  %v109_v14 = vld [vmem:[#allocation7 + $0x70] sm:$0xff]  ;;  %v2014_v15 = vpack.c.bf16 %v108_v13, %v107_v12  ;;  %v110_v16 = vld [vmem:[#allocation7 + $0x78] sm:$0xff]  ;;  %v111_v18 = vld [vmem:[#allocation7 + $0x80] sm:$0xff]  ;;  %s2397_s14 = smov 16  }
  0x5d   :  { %151 = vadd.xlane.f32.xlu0 %v150_v4  ;;  %2007 = vmatprep.subr.bf16.mxu0 %v2006_v9  ;;  %v2018_v17 = vpack.c.bf16 %v110_v16, %v109_v14  ;;  %v112_v19 = vld [vmem:[#allocation7 + $0x88] sm:$0xff]  ;;  %v113_v21 = vld [vmem:[#allocation7 + $0x90] sm:$0xff]  ;;  %v114_v22 = vld [vmem:[#allocation7 + $0x98] sm:$0xff]  ;;  %v167_v35 = vsub.s32 0, %v2534_v33  ;;  %s2398_s15 = smov 32   ;;  %vm802_vm4 = vcmask 392192  }
  0x5e   :  { %2009 = vmatpush3.bf16.msra.mxu0 %v2006_v9  ;;  %2015 = vmatprep.subr.bf16.mxu1 %v2014_v15  ;;  %v2022_v20 = vpack.c.bf16 %v112_v19, %v111_v18  ;;  %v2026_v23 = vpack.c.bf16 %v114_v22, %v113_v21  ;;  %v115_v24 = vld [vmem:[#allocation7 + $0xa0] sm:$0xff]  ;;  %v116_v25 = vld [vmem:[#allocation7 + $0xa8] sm:$0xff]  ;;  %v117_v44 = vld [vmem:[#allocation7 + $0xb0] sm:$0xff]  ;;  %vm811_vm5 = vcmask 523264   ;;  %s2399_s16 = smov [#allocation11]  }
  0x5f   :  { %2011 = vmatprep.subr.bf16.mxu0 %v2010_v11  ;;  %2017 = vmatpush3.bf16.msra.mxu1 %v2014_v15  ;;  %v2030_v26 = vpack.c.bf16 %v116_v25, %v115_v24  ;;  %v2540_v36 = vld [vmem:[%s2726_s2] sm:$0xf]  ;;  %v118_v45 = vld [vmem:[#allocation7 + $0xb8] sm:$0xff]  ;;  %v96_v48 = vld [vmem:[#allocation7 + $0x8] sm:$0xff]  ;;  %s2392_s2 = smov 112   ;;  %s1663_s17 = sshll.u32 %s2399_s16, 4  ;;  %s1664_s17 = int_to_ptr.vmem [resolvable:$true] %s1663_s17 }
  0x60   :  { %2019 = vmatprep.subr.bf16.mxu1 %v2018_v17  ;;  %v168_v37 = vrot.slane %v2540_v36, %v167_v35  ;;  %v2034_v46 = vpack.c.bf16 %v118_v45, %v117_v44  ;;  %v95_v47 = vld [vmem:[#allocation7] sm:$0xff]  ;;  %v97_v49 = vld [vmem:[#allocation7 + $0x10] sm:$0xff]  ;;  %v98_v51 = vld [vmem:[#allocation7 + $0x18] sm:$0xff]  ;;  %s2355_s18 = scalar_lea.vmem %s1664_s17, 256  ;;  %p2360_p13 = scmp.lt.s32.totalorder %s1664_s17, %s1664_s17 }
  0x61   :  { %154 = vadd.xlane.f32.xlu0 %v153_v5  ;;  %v2038_v50 = vpack.c.bf16 %v96_v48, %v95_v47  ;;  %v2042_v52 = vpack.c.bf16 %v98_v51, %v97_v49  ;;  %v99_v58 = vld [vmem:[#allocation7 + $0x20] sm:$0xff]  ;;  %v100_v59 = vld [vmem:[#allocation7 + $0x28] sm:$0xff]  ;;  %v101_v61 = vld [vmem:[#allocation7 + $0x30] sm:$0xff]  ;;  %p2356_p12 = scmp.ne.s32.totalorder %s1664_s17, %s2355_s18  ;;  %p2361_p0 = scmp.lt.s32.totalorder %s2355_s18, %s2355_s18 }
  0x62   :  { %2013 = vmatpush3.bf16.msra.mxu0 %v2010_v11  ;;  %v2046_v60 = vpack.c.bf16 %v100_v59, %v99_v58  ;;  %v102_v62 = vld [vmem:[#allocation7 + $0x38] sm:$0xff]  ;;  %v103_v2 = vld [vmem:[#allocation7 + $0x40] sm:$0xff]  ;;  %v104_v3 = vld [vmem:[#allocation7 + $0x48] sm:$0xff] }
  0x63   :  { %2021 = vmatpush3.bf16.msra.mxu1 %v2018_v17  ;;  %2039 = vmatprep.subr.bf16.mxu0 %v2038_v50  ;;  %v2050_v63 = vpack.c.bf16 %v102_v62, %v101_v61  ;;  %v2054_v4 = vpack.c.bf16 %v104_v3, %v103_v2  ;;  %v105_v5 = vld [vmem:[#allocation7 + $0x50] sm:$0xff]  ;;  %v106_v6 = vld [vmem:[#allocation7 + $0x58] sm:$0xff]  ;;  %v128_v16 = vld [vmem:[#allocation7 + $0x108] sm:$0xff]  ;;  %p2362_p1 = por %p2361_p0, %p2360_p13 }
  0x64   :  { %2023 = vmatprep.subr.bf16.mxu1 %v2022_v20  ;;  %v2058_v7 = vpack.c.bf16 %v106_v6, %v105_v5  ;;  %v130_v17 = vld [vmem:[#allocation7 + $0x118] sm:$0xff]  ;;  %v127_v18 = vld [vmem:[#allocation7 + $0x100] sm:$0xff]  ;;  %v129_v19 = vld [vmem:[#allocation7 + $0x110] sm:$0xff] }
  0x65   :  { %vm2565_vm3 = vmpackc.low %vm433_vm2, %vm433_vm2  ;;  %p2363_p2 = pnand %p2362_p1, %p2356_p12 }
  0x67   :  { %2025 = vmatpush3.bf16.msra.mxu1 %v2022_v20 }
  0x68   :  { %2027 = vmatprep.subr.bf16.mxu1 %v2026_v23 }
  0x6b   :  { %2029 = vmatpush3.bf16.msra.mxu1 %v2026_v23 }
  0x6c   :  { %2031 = vmatprep.subr.bf16.mxu1 %v2030_v26 }
  0x6f   :  { %2033 = vmatpush3.bf16.msra.mxu1 %v2030_v26 }
  0x70   :  { %2035 = vmatprep.subr.bf16.mxu1 %v2034_v46 }
  0x73   :  { %2037 = vmatpush3.bf16.msra.mxu1 %v2034_v46 }
  0xea   :  { %v152_v27 = vpop.xlane.xlu0 %151 }
  0xeb   :  { %v157_v28 = vmul.f32 0.03125, %v152_v27 }
  0xed   :  { %v159_v30 = vadd.f32 1e-06, %v157_v28 }
  0xee   :  { %v155_v31 = vpop.xlane.xlu0 %154 }
  0xef   :  { %2213 = vrsqrt.f32 %v159_v30  ;;  %v158_v32 = vmul.f32 0.03125, %v155_v31 }
  0xf1   :  { %v160_v34 = vadd.f32 1e-06, %v158_v32 }
  0xf3   :  { %2215 = vrsqrt.f32 %v160_v34 }
  0xf9   :  { %v2214_v38 = vpop.eup %2213 }
  0xfa   :  { %v163_v39 = vmul.f32 %v2214_v38, %v2524_v0 }
  0xfc   :  { %v169_v40 = vmul.f32 %v168_v37, %v163_v39 }
  0xfd   :  { %v2216_v41 = vpop.eup %2215 }
  0xfe   :  { %v164_v42 = vmul.f32 %v2216_v41, %v2526_v1  ;;  %1825 = vmatprep.mubr.msk.f32.mxu0 %vm149_vm0, %v169_v40 }
 0x100   :  { %v170_v43 = vmul.f32 %v168_v37, %v164_v42 }
 0x102   :  { %1826 = vmatmul.mubr.msk.f32.vlgmr.msra.gmra.mrb[0].mxu0 %vm149_vm0, %v170_v43 }
 0x103   :  { %2041 = vmatpush3.bf16.msra.mxu0 %v2038_v50 }
 0x104   :  { %2043 = vmatprep.subr.bf16.mxu0 %v2042_v52 }
 0x107   :  { %2045 = vmatpush3.bf16.msra.mxu0 %v2042_v52 }
 0x108   :  { %2047 = vmatprep.subr.bf16.mxu0 %v2046_v60 }
 0x10b   :  { %2049 = vmatpush3.bf16.msra.mxu0 %v2046_v60 }
 0x10c   :  { %2051 = vmatprep.subr.bf16.mxu0 %v2050_v63 }
 0x10f   :  { %2053 = vmatpush3.bf16.msra.mxu0 %v2050_v63 }
 0x110   :  { %2055 = vmatprep.subr.bf16.mxu0 %v2054_v4 }
 0x113   :  { %2057 = vmatpush3.bf16.msra.mxu0 %v2054_v4  ;;  %v808_v4 = vld [vmem:[#allocation5 + $0x8] sm:$0xff] }
 0x114   :  { %2059 = vmatprep.subr.bf16.mxu0 %v2058_v7 }
 0x117   :  { %2061 = vmatpush3.bf16.msra.mxu0 %v2058_v7  ;;  %v807_v7 = vld [vmem:[#allocation5] sm:$0xff] }
 0x1d5   :  { %v1827_v53 = vpop.f32.mrb[0].mxu0 }
 0x1d6   :  { %v243_v54 = vpop.f32.mrb[1].mxu0  ;;  %v253_v57 = vmul.f32 %v1827_v53, %v1827_v53 }
 0x1d7   :  { %v252_v55 = vmul.f32 %v243_v54, %v243_v54  ;;  %v2547_v56 = vpack.i.bf16 %v1827_v53, %v243_v54 }
 0x1d9   :  { %1852 = vmatprep.mubr.msk.f32.mxu1 %vm254_vm1, %v252_v55 }
 0x1da   :  { %1853 = vmatmul.mubr.msk.f32.vlgmr.msra.gmra.mrb[0].mxu1 %vm254_vm1, %v253_v57 }
 0x2ad   :  { %v1854_v8 = vpop.f32.mrb[0].mxu1 }
 0x2ae   :  { %v333_v9 = vadd.f32 1e-06, %v1854_v8  ;;  %v327_v10 = vpop.f32.mrb[1].mxu1 }
 0x2af   :  { %v328_v11 = vadd.f32 1e-06, %v327_v10 }
 0x2b0   :  { %2217 = vrsqrt.f32 %v333_v9 }
 0x2b1   :  { %2219 = vrsqrt.f32 %v328_v11 }
 0x2ba   :  { %v2218_v12 = vpop.eup %2217 }
 0x2bb   :  { %v2220_v13 = vpop.eup %2219  ;;  %v339_v14 = vmul.f32 %v2218_v12, %v1827_v53 }
 0x2bc   :  { %v338_v15 = vmul.f32 %v2220_v13, %v243_v54  ;;  %v119_v13 = vld [vmem:[#allocation7 + $0xc0] sm:$0xff] }
 0x2bd   :  { %v341_v21 = vmul.f32 %v339_v14, %v128_v16  ;;  %v121_v16 = vld [vmem:[#allocation7 + $0xd0] sm:$0xff] }
 0x2be   :  { %1879 = vmatprep.mubr.msk.f32.mxu0 %vm254_vm1, %v338_v15  ;;  %v340_v24 = vmul.f32 %v338_v15, %v127_v18 }
 0x2bf   :  { %1880 = vmatmul.mubr.msk.f32.vlgmr.msra.gmra.mrb[2].mxu0 %vm254_vm1, %v339_v14  ;;  %v120_v14 = vld [vmem:[#allocation7 + $0xc8] sm:$0xff] }
 0x2c0   :  { %v2086_v15 = vpack.c.bf16 %v120_v14, %v119_v13 }
 0x392   :  { %v1881_v20 = vpop.f32.mrb[2].mxu0 }
 0x393   :  { %v424_v22 = vmul.f32 %v1881_v20, %v130_v17  ;;  %v414_v23 = vpop.f32.mrb[3].mxu0  ;;  %v122_v17 = vld [vmem:[#allocation7 + $0xd8] sm:$0xff]  ;;  %v124_v20 = vld [vmem:[#allocation7 + $0xe8] sm:$0xff] }
 0x394   :  { %v423_v25 = vmul.f32 %v414_v23, %v129_v19  ;;  %v2090_v18 = vpack.c.bf16 %v122_v17, %v121_v16  ;;  %v123_v19 = vld [vmem:[#allocation7 + $0xe0] sm:$0xff]  ;;  %v126_v23 = vld [vmem:[#allocation7 + $0xf8] sm:$0xff] }
 0x395   :  { %v426_v26 = vadd.f32 %v424_v22, %v341_v21  ;;  %v2094_v21 = vpack.c.bf16 %v124_v20, %v123_v19  ;;  %v125_v22 = vld [vmem:[#allocation7 + $0xf0] sm:$0xff] }
 0x396   :  { %v425_v27 = vadd.f32 %v423_v25, %v340_v24  ;;  %v2098_v24 = vpack.c.bf16 %v126_v23, %v125_v22 }
 0x398   :  { %517 = vrot.lane.b32.xlu0 %v425_v27, %s2392_s2  ;;  %1886 = vmatprep.mubr.msk.f32.mxu1 %vm433_vm2, %v425_v27  ;;  %v2173_v28 = vpack.i.bf16 %v426_v26, %v425_v27 }
 0x39a   :  { %2174 = vrot.lane.b32.xlu1 %v2173_v28, %s2393_s4 }
 0x39e   :  { %2179 = vrot.lane.b32.xlu1 %v2173_v28, %s2394_s24 }
 0x3a2   :  { %519 = vrot.lane.b32.xlu1 %v426_v26, %s2392_s2 }
 0x3a6   :  { %602 = vrot.lane.b32.xlu1 %v426_v26, %s2395_s12 }
 0x3aa   :  { %600 = vrot.lane.b32.xlu1 %v425_v27, %s2395_s12 }
 0x3ae   :  { %691 = vrot.lane.b32.xlu1 %v425_v27, %s2396_s13 }
 0x3b2   :  { %693 = vrot.lane.b32.xlu1 %v426_v26, %s2396_s13 }
 0x40a   :  { %v518_v29 = vpop.permute.xlu0 %517 }
 0x40b   :  { %1893 = vmatprep.mubr.msk.f32.mxu0 %vm433_vm2, %v518_v29 }
 0x40c   :  { %v2175_v30 = vpop.permute.xlu1 %2174 }
 0x40d   :  { %v2177_v31 = vunpack.i.h.bf16 %v2175_v30  ;;  %v2176_v32 = vunpack.i.l.bf16 %v2175_v30 }
 0x40f   :  { %v2062_v35 = vpack.c.bf16 %v2177_v31, %v2176_v32 }
 0x410   :  { %v2180_v37 = vpop.permute.xlu1 %2179 }
 0x411   :  { %v2182_v38 = vunpack.i.h.bf16 %v2180_v37  ;;  %v2181_v39 = vunpack.i.l.bf16 %v2180_v37  ;;  %2064 = vmatprep.subr.msk.bf16.mxu1 %vm2565_vm3, %v2062_v35  ;;  %2070 = vmatprep.subr.msk.bf16.mxu0 %vm2565_vm3, %v2062_v35 }
 0x412   :  { %2067 = vmatpush3.bf16.xpose.msk.msra.mxu1 %vm2565_vm3, %v2062_v35  ;;  %2073 = vmatpush3.bf16.xpose.msk.msra.mxu0 %vm2565_vm3, %v2062_v35 }
 0x413   :  { %v2074_v40 = vpack.c.bf16 %v2182_v38, %v2181_v39 }
 0x414   :  { %v520_v41 = vpop.permute.xlu1 %519 }
 0x415   :  { %2076 = vmatprep.subr.msk.bf16.mxu1 %vm2565_vm3, %v2074_v40  ;;  %2082 = vmatprep.subr.msk.bf16.mxu0 %vm2565_vm3, %v2074_v40 }
 0x418   :  { %v603_v42 = vpop.permute.xlu1 %602 }
 0x419   :  { %1887 = vmatmul.mubr.msk.f32.vlgmr.msra.gmra.mrb[2].mxu1 %vm433_vm2, %v426_v26  ;;  %1894 = vmatmul.mubr.msk.f32.vlgmr.msra.gmra.mrb[4].mxu0 %vm433_vm2, %v520_v41 }
 0x41a   :  { %2079 = vmatpush3.bf16.xpose.msk.msra.mxu1 %vm2565_vm3, %v2074_v40  ;;  %2085 = vmatpush3.bf16.xpose.msk.msra.mxu0 %vm2565_vm3, %v2074_v40 }
 0x41b   :  { %2087 = vmatprep.subr.bf16.mxu1 %v2086_v15 }
 0x41c   :  { %v601_v43 = vpop.permute.xlu1 %600 }
 0x41d   :  { %1900 = vmatprep.mubr.msk.f32.mxu1 %vm433_vm2, %v601_v43 }
 0x420   :  { %v692_v44 = vpop.permute.xlu1 %691 }
 0x421   :  { %1901 = vmatmul.mubr.msk.f32.vlgmr.msra.gmra.mrb[4].mxu1 %vm433_vm2, %v603_v42  ;;  %1907 = vmatprep.mubr.msk.f32.mxu0 %vm433_vm2, %v692_v44 }
 0x422   :  { %2089 = vmatpush3.bf16.msra.mxu1 %v2086_v15 }
 0x423   :  { %2091 = vmatprep.subr.bf16.mxu1 %v2090_v18 }
 0x424   :  { %v694_v45 = vpop.permute.xlu1 %693 }
 0x425   :  { %1908 = vmatmul.mubr.msk.f32.vlgmr.msra.gmra.mrb[6].mxu0 %vm433_vm2, %v694_v45 }
 0x426   :  { %2093 = vmatpush3.bf16.msra.mxu1 %v2090_v18 }
 0x427   :  { %2095 = vmatprep.subr.bf16.mxu1 %v2094_v21 }
 0x42a   :  { %2097 = vmatpush3.bf16.msra.mxu1 %v2094_v21 }
 0x42b   :  { %2099 = vmatprep.subr.bf16.mxu1 %v2098_v24 }
 0x42e   :  { %2101 = vmatpush3.bf16.msra.mxu1 %v2098_v24 }
 0x4ec   :  { %v1888_v46 = vpop.f32.mrb[2].mxu1  ;;  %v1895_v47 = vpop.f32.mrb[4].mxu0 }
 0x4ed   :  { %778 = vrot.lane.b32.xlu0 %v1895_v47, %s2397_s14  ;;  %v508_v48 = vpop.f32.mrb[3].mxu1  ;;  %v591_v49 = vpop.f32.mrb[5].mxu0 }
 0x4ee   :  { %776 = vrot.lane.b32.xlu1 %v591_v49, %s2397_s14 }
 0x4f4   :  { %v1902_v50 = vpop.f32.mrb[4].mxu1 }
 0x4f5   :  { %786 = vrot.lane.b32.xlu0 %v1902_v50, %s2398_s15  ;;  %v682_v51 = vpop.f32.mrb[5].mxu1 }
 0x4f6   :  { %784 = vrot.lane.b32.xlu1 %v682_v51, %s2398_s15 }
 0x4f8   :  { %v1909_v52 = vpop.f32.mrb[6].mxu0 }
 0x4f9   :  { %v765_v53 = vpop.f32.mrb[7].mxu0  ;;  %794 = vrot.lane.b32.xlu0 %v1909_v52, %s2394_s24 }
 0x4fa   :  { %792 = vrot.lane.b32.xlu1 %v765_v53, %s2394_s24 }
 0x55f   :  { %v779_v54 = vpop.permute.xlu0 %778 }
 0x560   :  { %v777_v55 = vpop.permute.xlu1 %776  ;;  %v799_v59 = vsel %vm433_vm2, %v1888_v46, %v779_v54  ;;  %v2625_v54 = vld [vmem:[#allocation10] sm:$0xff] }
 0x561   :  { %v798_v60 = vsel %vm433_vm2, %v508_v48, %v777_v55  ;;  %v2627_v55 = vld [vmem:[#allocation10 + $0x8] sm:$0xff] }
 0x567   :  { %v787_v57 = vpop.permute.xlu0 %786 }
 0x568   :  { %v785_v58 = vpop.permute.xlu1 %784  ;;  %v801_v61 = vsel %vm149_vm0, %v799_v59, %v787_v57  ;;  %v2118_v57 = vpack.c.bf16 %v2627_v55, %v2625_v54 }
 0x569   :  { %v800_v63 = vsel %vm149_vm0, %v798_v60, %v785_v58  ;;  %v2631_v60 = vld [vmem:[#allocation10 + $0x10] sm:$0xff] }
 0x56b   :  { %v795_v62 = vpop.permute.xlu0 %794 }
 0x56c   :  { %v804_v2 = vsel %vm802_vm4, %v801_v61, %v795_v62  ;;  %v793_v3 = vpop.permute.xlu1 %792  ;;  %v2633_v61 = vld [vmem:[#allocation10 + $0x18] sm:$0xff] }
 0x56d   :  { %v806_v5 = vmul.f32 0.25, %v804_v2  ;;  %v803_v6 = vsel %vm802_vm4, %v800_v63, %v793_v3  ;;  %v2122_v62 = vpack.c.bf16 %v2633_v61, %v2631_v60  ;;  %v2637_v63 = vld [vmem:[#allocation10 + $0x20] sm:$0xff]  ;;  %v2639_v2 = vld [vmem:[#allocation10 + $0x28] sm:$0xff] }
 0x56e   :  { %v805_v8 = vmul.f32 0.25, %v803_v6  ;;  %v2126_v3 = vpack.c.bf16 %v2639_v2, %v2637_v63 }
 0x56f   :  { %v810_v9 = vadd.f32 %v808_v4, %v806_v5  ;;  %v2643_v4 = vld [vmem:[#allocation10 + $0x30] sm:$0xff]  ;;  %v2645_v5 = vld [vmem:[#allocation10 + $0x38] sm:$0xff] }
 0x570   :  { %v809_v10 = vadd.f32 %v807_v7, %v805_v8  ;;  %v2130_v6 = vpack.c.bf16 %v2645_v5, %v2643_v4 }
 0x571   :  { %v815_v11 = vsel %vm811_vm5, %v810_v9, -inf }
 0x572   :  { %816 = vmax.xlane.f32.xlu0 %v815_v11  ;;  %v812_v12 = vsel %vm811_vm5, %v809_v10, -inf }
 0x573   :  { %813 = vmax.xlane.f32.xlu1 %v812_v12 }
 0x584   :  { %2189 = vrot.lane.b32.xlu1 %v2547_v56, %s2397_s14 }
 0x588   :  { %2184 = vrot.lane.b32.xlu0 %v2547_v56, %s2398_s15 }
 0x5ff   :  { %v817_v25 = vpop.xlane.xlu0 %816 }
 0x600   :  { %v819_v26 = vsub.f32 %v810_v9, %v817_v25  ;;  %v814_v27 = vpop.xlane.xlu1 %813 }
 0x601   :  { %v818_v28 = vsub.f32 %v809_v10, %v814_v27 }
 0x602   :  { %v822_v29 = vmul.f32 1.442695, %v819_v26 }
 0x603   :  { %v820_v30 = vmul.f32 1.442695, %v818_v28  ;;  %v2185_v31 = vpop.permute.xlu0 %2184 }
 0x604   :  { %v2187_v32 = vunpack.i.h.bf16 %v2185_v31  ;;  %v2186_v34 = vunpack.i.l.bf16 %v2185_v31  ;;  %v2190_v40 = vpop.permute.xlu1 %2189 }
 0x605   :  { %2221 = vpow2.f32 %v820_v30  ;;  %v2192_v43 = vunpack.i.h.bf16 %v2190_v40  ;;  %v2191_v44 = vunpack.i.l.bf16 %v2190_v40 }
 0x606   :  { %2223 = vpow2.f32 %v822_v29  ;;  %v2102_v35 = vpack.c.bf16 %v2187_v32, %v2186_v34 }
 0x607   :  { %v2110_v47 = vpack.c.bf16 %v2192_v43, %v2191_v44 }
 0x608   :  { %2103 = vmatprep.subr.bf16.mxu0 %v2102_v35 }
 0x609   :  { %2105 = vmatpush3.bf16.msra.mxu0 %v2102_v35 }
 0x60a   :  { %2107 = vmatprep.subr.bf16.mxu0 %v2102_v35 }
 0x60f   :  { %v2222_v56 = vpop.eup %2221 }
 0x610   :  { %v2224_v37 = vpop.eup %2223  ;;  %1926 = vmatprep.mubr.msk.f32.mxu1 %vm811_vm5, %v2222_v56 }
 0x611   :  { %1927 = vmatmul.mubr.msk.f32.vlgmr.msra.gmra.mrb[6].mxu1 %vm811_vm5, %v2224_v37 }
 0x6e4   :  { %v1928_v38 = vpop.f32.mrb[6].mxu1 }
 0x6e5   :  { %2225 = vrcp.f32 %v1928_v38  ;;  %v896_v39 = vpop.f32.mrb[7].mxu1  ;;  %v1382_v38 = vsub.s32 1, %v2534_v33 }
 0x6e6   :  { %2227 = vrcp.f32 %v896_v39 }
 0x6e7   :  { %v1383_v39 = vrot.slane %v2540_v36, %v1382_v38 }
 0x6ef   :  { %v2226_v41 = vpop.eup %2225 }
 0x6f0   :  { %v2228_v42 = vpop.eup %2227  ;;  %v908_v45 = vmul.f32 %v2226_v41, %v2224_v37 }
 0x6f1   :  { %v906_v46 = vmul.f32 %v2228_v42, %v2222_v56 }
 0x6f2   :  { %1000 = vrot.lane.b32.xlu0 %v908_v45, %s2392_s2 }
 0x6f3   :  { %998 = vrot.lane.b32.xlu1 %v906_v46, %s2392_s2  ;;  %1933 = vmatprep.mubr.msk.f32.mxu0 %vm433_vm2, %v906_v46 }
 0x6f4   :  { %1934 = vmatmul.mubr.msk.f32.vlgmr.msra.gmra.mrb[8].mxu0 %vm433_vm2, %v908_v45 }
 0x6f5   :  { %2109 = vmatpush3.bf16.msra.mxu0 %v2102_v35 }
 0x6f6   :  { %2111 = vmatprep.subr.bf16.mxu0 %v2110_v47  ;;  %1083 = vrot.lane.b32.xlu0 %v908_v45, %s2395_s12 }
 0x6f7   :  { %1081 = vrot.lane.b32.xlu1 %v906_v46, %s2395_s12 }
 0x6fa   :  { %1172 = vrot.lane.b32.xlu0 %v908_v45, %s2396_s13 }
 0x6fb   :  { %1170 = vrot.lane.b32.xlu1 %v906_v46, %s2396_s13 }
 0x764   :  { %v1001_v48 = vpop.permute.xlu0 %1000 }
 0x765   :  { %v999_v49 = vpop.permute.xlu1 %998 }
 0x766   :  { %1940 = vmatprep.mubr.msk.f32.mxu0 %vm433_vm2, %v999_v49 }
 0x767   :  { %1941 = vmatmul.mubr.msk.f32.vlgmr.msra.gmra.mrb[10].mxu0 %vm433_vm2, %v1001_v48 }
 0x768   :  { %2113 = vmatpush3.bf16.msra.mxu0 %v2110_v47  ;;  %v1084_v50 = vpop.permute.xlu0 %1083 }
 0x769   :  { %2115 = vmatprep.subr.bf16.mxu0 %v2110_v47  ;;  %v1082_v51 = vpop.permute.xlu1 %1081 }
 0x76a   :  { %1947 = vmatprep.mubr.msk.f32.mxu0 %vm433_vm2, %v1082_v51 }
 0x76b   :  { %1948 = vmatmul.mubr.msk.f32.vlgmr.msra.gmra.mrb[12].mxu0 %vm433_vm2, %v1084_v50 }
 0x76c   :  { %2117 = vmatpush3.bf16.msra.mxu0 %v2110_v47  ;;  %v1173_v53 = vpop.permute.xlu0 %1172 }
 0x76d   :  { %v1171_v52 = vpop.permute.xlu1 %1170  ;;  %2119 = vmatprep.subr.bf16.mxu0 %v2118_v57 }
 0x76e   :  { %1954 = vmatprep.mubr.msk.f32.mxu0 %vm433_vm2, %v1171_v52  ;;  %v135_v52 = vld [vmem:[#allocation8 + $0x20] sm:$0xff] }
 0x76f   :  { %1955 = vmatmul.mubr.msk.f32.vlgmr.msra.gmra.mrb[14].mxu0 %vm433_vm2, %v1173_v53  ;;  %v136_v53 = vld [vmem:[#allocation8 + $0x28] sm:$0xff] }
 0x770   :  { %2121 = vmatpush3.bf16.msra.mxu0 %v2118_v57  ;;  %v2134_v57 = vpack.c.bf16 %v136_v53, %v135_v52 }
 0x771   :  { %2123 = vmatprep.subr.bf16.mxu0 %v2122_v62 }
 0x772   :  { %2135 = vmatprep.subr.bf16.mxu1 %v2134_v57 }
 0x773   :  { %2137 = vmatpush3.bf16.msra.mxu1 %v2134_v57 }
 0x774   :  { %2125 = vmatpush3.bf16.msra.mxu0 %v2122_v62  ;;  %v2198_v62 = vpack.i.bf16 %v2633_v61, %v2631_v60  ;;  %v1406_v61 = vsub.s32 2, %v2534_v33 }
 0x775   :  { %2127 = vmatprep.subr.bf16.mxu0 %v2126_v3 }
 0x778   :  { %2129 = vmatpush3.bf16.msra.mxu0 %v2126_v3  ;;  %v2203_v3 = vpack.i.bf16 %v2639_v2, %v2637_v63  ;;  %v1407_v63 = vrot.slane %v2540_v36, %v1406_v61  ;;  %v1650_v61 = vsub.s32 3, %v2534_v33 }
 0x779   :  { %2131 = vmatprep.subr.bf16.mxu0 %v2130_v6 }
 0x77c   :  { %2133 = vmatpush3.bf16.msra.mxu0 %v2130_v6  ;;  %v2208_v6 = vpack.i.bf16 %v2645_v5, %v2643_v4 }
 0x7c7   :  { %v1935_v58 = vpop.f32.mrb[8].mxu0 }
 0x7c8   :  { %v989_v59 = vpop.f32.mrb[9].mxu0 }
 0x83a   :  { %v1942_v7 = vpop.f32.mrb[10].mxu0 }
 0x83b   :  { %1257 = vrot.lane.b32.xlu0 %v1942_v7, %s2397_s14  ;;  %v1072_v8 = vpop.f32.mrb[11].mxu0 }
 0x83c   :  { %1255 = vrot.lane.b32.xlu1 %v1072_v8, %s2397_s14 }
 0x83e   :  { %v1949_v9 = vpop.f32.mrb[12].mxu0 }
 0x83f   :  { %1265 = vrot.lane.b32.xlu0 %v1949_v9, %s2398_s15  ;;  %v1161_v10 = vpop.f32.mrb[13].mxu0 }
 0x840   :  { %1263 = vrot.lane.b32.xlu1 %v1161_v10, %s2398_s15 }
 0x842   :  { %v1956_v11 = vpop.f32.mrb[14].mxu0 }
 0x843   :  { %1273 = vrot.lane.b32.xlu0 %v1956_v11, %s2394_s24  ;;  %v1244_v12 = vpop.f32.mrb[15].mxu0 }
 0x844   :  { %1271 = vrot.lane.b32.xlu1 %v1244_v12, %s2394_s24 }
 0x8ad   :  { %v1258_v13 = vpop.permute.xlu0 %1257 }
 0x8ae   :  { %v1256_v14 = vpop.permute.xlu1 %1255  ;;  %v1278_v19 = vsel %vm433_vm2, %v1935_v58, %v1258_v13 }
 0x8af   :  { %v1277_v17 = vsel %vm433_vm2, %v989_v59, %v1256_v14  ;;  %v2193_v59 = vpack.i.bf16 %v2627_v55, %v2625_v54 }
 0x8b1   :  { %v1266_v15 = vpop.permute.xlu0 %1265 }
 0x8b2   :  { %v1264_v16 = vpop.permute.xlu1 %1263  ;;  %v1280_v22 = vsel %vm149_vm0, %v1278_v19, %v1266_v15 }
 0x8b3   :  { %v1279_v20 = vsel %vm149_vm0, %v1277_v17, %v1264_v16 }
 0x8b5   :  { %v1274_v18 = vpop.permute.xlu0 %1273 }
 0x8b6   :  { %v1272_v21 = vpop.permute.xlu1 %1271  ;;  %v1282_v24 = vsel %vm802_vm4, %v1280_v22, %v1274_v18 }
 0x8b7   :  { %v1281_v23 = vsel %vm802_vm4, %v1279_v20, %v1272_v21 }
 0x8b8   :  { %1973 = vmatprep.mubr.msk.f32.mxu0 %vm811_vm5, %v1281_v23 }
 0x8b9   :  { %1974 = vmatmul.mubr.msk.f32.vlgmr.msra.gmra.mrb[16].mxu0 %vm811_vm5, %v1282_v24 }
 0x98c   :  { %v1975_v25 = vpop.f32.mrb[16].mxu0 }
 0x98d   :  { %v1365_v26 = vmul.f32 %v1975_v25, %v1975_v25  ;;  %v1355_v27 = vpop.f32.mrb[17].mxu0 }
 0x98e   :  { %v1364_v28 = vmul.f32 %v1355_v27, %v1355_v27 }
 0x98f   :  { %v1369_v29 = vsel %vm149_vm0, %v1365_v26, 0.0 }
 0x990   :  { %1370 = vadd.xlane.f32.xlu0 %v1369_v29  ;;  %v1366_v30 = vsel %vm149_vm0, %v1364_v28, 0.0 }
 0x991   :  { %1367 = vadd.xlane.f32.xlu1 %v1366_v30 }
 0xa1d   :  { %v1371_v31 = vpop.xlane.xlu0 %1370 }
 0xa1e   :  { %v1373_v32 = vmul.f32 0.03125, %v1371_v31  ;;  %v1368_v34 = vpop.xlane.xlu1 %1367 }
 0xa1f   :  { %v1372_v35 = vmul.f32 0.03125, %v1368_v34 }
 0xa20   :  { %v1375_v56 = vadd.f32 1e-06, %v1373_v32 }
 0xa21   :  { %v1374_v37 = vadd.f32 1e-06, %v1372_v35 }
 0xa22   :  { %2229 = vrsqrt.f32 %v1375_v56 }
 0xa23   :  { %2231 = vrsqrt.f32 %v1374_v37 }
 0xa2c   :  { %v2230_v40 = vpop.eup %2229 }
 0xa2d   :  { %v2232_v41 = vpop.eup %2231  ;;  %v1379_v42 = vmul.f32 %v2230_v40, %v1975_v25 }
 0xa2e   :  { %v1378_v43 = vmul.f32 %v2232_v41, %v1355_v27 }
 0xa2f   :  { %v1385_v44 = vmul.f32 %v1383_v39, %v1379_v42 }
 0xa30   :  { %v1384_v45 = vmul.f32 %v1383_v39, %v1378_v43 }
 0xa31   :  { %v2668_v46 = vadd.f32 %v1385_v44, %v2526_v1  ;;  %v137_v1 = vld [vmem:[#allocation8 + $0x30] sm:$0xff] }
 0xa32   :  { %v2671_v47 = vadd.f32 %v1384_v45, %v2524_v0  ;;  %v138_v0 = vld [vmem:[#allocation8 + $0x38] sm:$0xff] }
 0xa33   :  { %v1389_v48 = vmul.f32 %v2668_v46, %v2668_v46  ;;  %v2138_v58 = vpack.c.bf16 %v138_v0, %v137_v1 }
 0xa34   :  { %v1388_v49 = vmul.f32 %v2671_v47, %v2671_v47 }
 0xa35   :  { %v1393_v50 = vsel %vm149_vm0, %v1389_v48, 0.0  ;;  %2139 = vmatprep.subr.bf16.mxu1 %v2138_v58 }
 0xa36   :  { %1394 = vadd.xlane.f32.xlu1 %v1393_v50  ;;  %v1390_v51 = vsel %vm149_vm0, %v1388_v49, 0.0  ;;  %2141 = vmatpush3.bf16.msra.mxu1 %v2138_v58 }
 0xa37   :  { %1391 = vadd.xlane.f32.xlu0 %v1390_v51 }
 0xa47   :  { %2199 = vrot.lane.b32.xlu1 %v2198_v62, %s2395_s12 }
 0xa4b   :  { %2204 = vrot.lane.b32.xlu1 %v2203_v3, %s2395_s12 }
 0xa4d   :  { %2194 = vrot.lane.b32.xlu0 %v2193_v59, %s2395_s12 }
 0xa51   :  { %2209 = vrot.lane.b32.xlu0 %v2208_v6, %s2395_s12 }
 0xac3   :  { %v1395_v7 = vpop.xlane.xlu1 %1394 }
 0xac4   :  { %v1397_v8 = vmul.f32 0.03125, %v1395_v7  ;;  %v1392_v54 = vpop.xlane.xlu0 %1391 }
 0xac5   :  { %v1396_v55 = vmul.f32 0.03125, %v1392_v54 }
 0xac6   :  { %v1399_v9 = vadd.f32 1e-06, %v1397_v8 }
 0xac7   :  { %v1398_v60 = vadd.f32 1e-06, %v1396_v55  ;;  %v2200_v14 = vpop.permute.xlu1 %2199 }
 0xac8   :  { %2233 = vrsqrt.f32 %v1399_v9  ;;  %v2195_v13 = vpop.permute.xlu0 %2194  ;;  %v2202_v17 = vunpack.i.h.bf16 %v2200_v14  ;;  %v2201_v18 = vunpack.i.l.bf16 %v2200_v14 }
 0xac9   :  { %2235 = vrsqrt.f32 %v1398_v60  ;;  %v2197_v15 = vunpack.i.h.bf16 %v2195_v13  ;;  %v2196_v16 = vunpack.i.l.bf16 %v2195_v13 }
 0xaca   :  { %v2146_v20 = vpack.c.bf16 %v2202_v17, %v2201_v18 }
 0xacb   :  { %v2142_v19 = vpack.c.bf16 %v2197_v15, %v2196_v16  ;;  %v2205_v21 = vpop.permute.xlu1 %2204 }
 0xacc   :  { %v2210_v22 = vpop.permute.xlu0 %2209  ;;  %v2207_v23 = vunpack.i.h.bf16 %v2205_v21  ;;  %v2206_v24 = vunpack.i.l.bf16 %v2205_v21 }
 0xacd   :  { %2143 = vmatprep.subr.bf16.mxu1 %v2142_v19  ;;  %v2212_v26 = vunpack.i.h.bf16 %v2210_v22  ;;  %v2211_v27 = vunpack.i.l.bf16 %v2210_v22 }
 0xace   :  { %v2150_v25 = vpack.c.bf16 %v2207_v23, %v2206_v24 }
 0xacf   :  { %v2154_v28 = vpack.c.bf16 %v2212_v26, %v2211_v27 }
 0xad2   :  { %v2234_v10 = vpop.eup %2233 }
 0xad3   :  { %v2236_v2 = vpop.eup %2235  ;;  %v1403_v4 = vmul.f32 %v2234_v10, %v2668_v46  ;;  %v1651_v10 = vrot.slane %v2540_v36, %v1650_v61 }
 0xad4   :  { %v1402_v5 = vmul.f32 %v2236_v2, %v2671_v47 }
 0xad5   :  { %v1409_v12 = vmul.f32 %v1407_v63, %v1403_v4 }
 0xad6   :  { %v1408_v11 = vmul.f32 %v1407_v63, %v1402_v5 }
 0xad8   :  { %1984 = vmatprep.mubr.msk.f32.mxu1 %vm149_vm0, %v1408_v11 }
 0xad9   :  { %1985 = vmatmul.mubr.msk.f32.vlgmr.msra.gmra.mrb[8].mxu1 %vm149_vm0, %v1409_v12 }
 0xada   :  { %2145 = vmatpush3.bf16.msra.mxu1 %v2142_v19 }
 0xadb   :  { %2147 = vmatprep.subr.bf16.mxu1 %v2146_v20 }
 0xade   :  { %2149 = vmatpush3.bf16.msra.mxu1 %v2146_v20 }
 0xadf   :  { %2151 = vmatprep.subr.bf16.mxu1 %v2150_v25 }
 0xae2   :  { %2153 = vmatpush3.bf16.msra.mxu1 %v2150_v25 }
 0xae3   :  { %2155 = vmatprep.subr.bf16.mxu1 %v2154_v28 }
 0xae6   :  { %2157 = vmatpush3.bf16.msra.mxu1 %v2154_v28 }
 0xbac   :  { %v1986_v29 = vpop.f32.mrb[8].mxu1 }
 0xbad   :  { %1513 = vrot.lane.b32.xlu0 %v1986_v29, %s2393_s4  ;;  %v1482_v30 = vpop.f32.mrb[9].mxu1  ;;  %v1492_v32 = vmul.f32 %v1986_v29, %v1986_v29 }
 0xbae   :  { %1511 = vrot.lane.b32.xlu1 %v1482_v30, %s2393_s4  ;;  %v1491_v31 = vmul.f32 %v1482_v30, %v1482_v30 }
 0xbaf   :  { %v1494_v35 = vmul.f32 %v1986_v29, %v1492_v32 }
 0xbb0   :  { %v1493_v34 = vmul.f32 %v1491_v31, %v1482_v30 }
 0xbb1   :  { %v1496_v37 = vmul.f32 0.044715, %v1494_v35 }
 0xbb2   :  { %v1495_v56 = vmul.f32 0.044715, %v1493_v34 }
 0xbb3   :  { %v1498_v39 = vadd.f32 %v1986_v29, %v1496_v37 }
 0xbb4   :  { %v1497_v38 = vadd.f32 %v1495_v56, %v1482_v30 }
 0xbb5   :  { %v1500_v41 = vmul.f32 0.7978846, %v1498_v39 }
 0xbb6   :  { %v1499_v40 = vmul.f32 0.7978846, %v1497_v38 }
 0xbb8   :  { %2237 = vtanh.f32 %v1499_v40 }
 0xbb9   :  { %2239 = vtanh.f32 %v1500_v41 }
 0xbc2   :  { %v2238_v42 = vpop.eup %2237 }
 0xbc3   :  { %v2240_v43 = vpop.eup %2239  ;;  %v1503_v44 = vadd.f32 1.0, %v2238_v42 }
 0xbc4   :  { %v1504_v45 = vadd.f32 1.0, %v2240_v43 }
 0xbc5   :  { %v1505_v48 = vmul.f32 0.5, %v1503_v44 }
 0xbc6   :  { %v1506_v49 = vmul.f32 0.5, %v1504_v45 }
 0xbc7   :  { %v1507_v51 = vmul.f32 %v1505_v48, %v1482_v30 }
 0xbc8   :  { %v1508_v52 = vmul.f32 %v1986_v29, %v1506_v49 }
 0xc1f   :  { %v1514_v50 = vpop.permute.xlu0 %1513 }
 0xc20   :  { %v1512_v53 = vpop.permute.xlu1 %1511  ;;  %v1518_v1 = vmul.f32 %v1514_v50, %v1508_v52 }
 0xc21   :  { %v1517_v57 = vmul.f32 %v1512_v53, %v1507_v51 }
 0xc23   :  { %2003 = vmatprep.mubr.msk.f32.mxu1 %vm811_vm5, %v1517_v57 }
 0xc24   :  { %2004 = vmatmul.mubr.msk.f32.vlgmr.msra.gmra.mrb[10].mxu1 %vm811_vm5, %v1518_v1 }
 0xcf7   :  { %v2005_v0 = vpop.f32.mrb[10].mxu1 }
 0xcf8   :  { %v1633_v58 = vmul.f32 %v2005_v0, %v2005_v0  ;;  %v1623_v59 = vpop.f32.mrb[11].mxu1 }
 0xcf9   :  { %v1632_v62 = vmul.f32 %v1623_v59, %v1623_v59 }
 0xcfa   :  { %v1637_v3 = vsel %vm149_vm0, %v1633_v58, 0.0 }
 0xcfb   :  { %1638 = vadd.xlane.f32.xlu0 %v1637_v3  ;;  %v1634_v6 = vsel %vm149_vm0, %v1632_v62, 0.0 }
 0xcfc   :  { %1635 = vadd.xlane.f32.xlu1 %v1634_v6 }
 0xd88   :  { %v1639_v7 = vpop.xlane.xlu0 %1638 }
 0xd89   :  { %v1641_v8 = vmul.f32 0.03125, %v1639_v7  ;;  %v1636_v54 = vpop.xlane.xlu1 %1635 }
 0xd8a   :  { %v1640_v55 = vmul.f32 0.03125, %v1636_v54 }
 0xd8b   :  { %v1643_v9 = vadd.f32 1e-06, %v1641_v8 }
 0xd8c   :  { %v1642_v60 = vadd.f32 1e-06, %v1640_v55 }
 0xd8d   :  { %2241 = vrsqrt.f32 %v1643_v9 }
 0xd8e   :  { %2243 = vrsqrt.f32 %v1642_v60 }
 0xd97   :  { %v2242_v63 = vpop.eup %2241 }
 0xd98   :  { %v2244_v2 = vpop.eup %2243  ;;  %v1647_v4 = vmul.f32 %v2242_v63, %v2005_v0 }
 0xd99   :  { %v1646_v5 = vmul.f32 %v2244_v2, %v1623_v59 }
 0xd9a   :  { %v1653_v11 = vmul.f32 %v1651_v10, %v1647_v4 }
 0xd9b   :  { %v1652_v12 = vmul.f32 %v1651_v10, %v1646_v5 }
 0xd9c   :  { %v1655_v13 = vadd.f32 %v1653_v11, %v2668_v46 }
 0xd9d   :  { %v1654_v14 = vadd.f32 %v1652_v12, %v2671_v47 }
 0xd9e   :  { %1657 = vst.msk [vmem:[#allocation11 + $0x8] sm:$0xff] %vm149_vm0, %v1655_v13 }
 0xd9f   :  { %1656 = vst.msk [vmem:[#allocation11] sm:$0xff] %vm149_vm0, %v1654_v14 }
 0xda0   :  { %2366 = shalt.err (!%p2363_p2)
}
 0xda1   :  { %s2367_s0 = scalar_lea.hbm %s2730_s6, 256 }
 0xda2   :  { %p2368_p3 = scmp.ne.s32.totalorder %s2730_s6, %s2367_s0  ;;  %p2371_p4 = scmp.lt.u32.totalorder %s2367_s0, %s2730_s6 }
 0xda4   :  { %p2373_p5 = pnand %p2371_p4, %p2368_p3 }
 0xda6   :  { %2376 = shalt.err (!%p2373_p5)
}
 0xda7   :  { %1669 = dma.vmem_to_hbm [thread:$0]  %s1664_s17, 256, %s2730_s6, [#allocation4], %s2387_s9, %s2387_s9, %s2388_s10  }
 0xda8   :  { %2383 = dma.done.wait [#allocation4], 256  }
 0xda9   :  { %2384 = vsyncadd [#allocation4], 4294967040 }
 0xdaa   :  { %1673 = vsyncpa [#allocation3], 1 }
 0xdab   :  { %1674 = vsyncpa [#allocation6], 1 }
 0xdac   :  { %1675 = vsyncpa [#allocation9], 1 }
 0xdad   :  { %1676 = vsyncpa [#allocation4], 1 }

</bundles_post_ra>
